<compile_context>
chip_gen: v5e
topology: v5e:2x2
jax: 0.10.0
libtpu: 0.0.40
codegen_flags: <defaults>
</compile_context>

<pallas_src>
import functools

import jax
import jax.numpy as jnp
import numpy as np
from jax.experimental import pallas as pl
from jax.experimental.pallas import tpu as pltpu


def conv_block_kernel(x_ref, halo_ref, w1_ref, t1_ref, w2_ref, t2_ref, o_ref,
                      *, tile_l, ksize, seq_len, compute_dtype):
    """One (batch, L-tile) block per grid step.

    x_ref    : (1, TL, C)     current x tile (channel-last)
    halo_ref : (1, 1, 2H, C)  H = K-1 left-halo rows then H right-halo rows
    w1_ref   : (K*C, C)       conv1 weight (BN1 scale folded), W[k*C + c, o]
    t1_ref   : (1, C)         conv1 bias + BN1 shift
    w2_ref   : (K*C, C)       conv2 weight (BN2 scale folded)
    t2_ref   : (1, C)         conv2 bias + BN2 shift
    o_ref    : (1, TL, C)
    """
    TL, K = tile_l, ksize
    pad = K // 2
    H = K - 1                 # halo rows per side needed for two stacked convs
    L1 = TL + 2 * pad         # conv1 rows needed (conv2's input incl. its halo)

    i = pl.program_id(1)

    cur = x_ref[0]                                  # (TL, C) f32
    halo = halo_ref[0, 0]                           # (2H, C) f32
    xh = jnp.concatenate([halo[:H, :], cur, halo[H:, :]], axis=0)   # (TL + 2H, C)
    xh_c = xh.astype(compute_dtype)

    # ---- conv1 + BN1 + ReLU: K taps folded into one contraction of depth K*C ----
    slab1 = jnp.concatenate([xh_c[k:k + L1, :] for k in range(K)], axis=1)   # (L1, K*C)
    h1 = jnp.dot(slab1, w1_ref[...], preferred_element_type=jnp.float32)
    h1 = jnp.maximum(h1 + t1_ref[...], 0.0)                                  # (L1, C) f32

    # PyTorch Conv1d zero-pads the *activation* h for conv2: zero any h1 row whose
    # global sequence position lies outside [0, L).
    row = jax.lax.broadcasted_iota(jnp.int32, (L1, 1), 0)
    gpos = i * TL - pad + row
    h1 = jnp.where((gpos >= 0) & (gpos < seq_len), h1, 0.0)

    # ---- conv2 + BN2 + residual + ReLU ----
    h1_c = h1.astype(compute_dtype)
    slab2 = jnp.concatenate([h1_c[k:k + TL, :] for k in range(K)], axis=1)   # (TL, K*C)
    out = jnp.dot(slab2, w2_ref[...], preferred_element_type=jnp.float32)
    out = jnp.maximum(out + t2_ref[...] + cur, 0.0)                          # (TL, C)

    o_ref[0] = out.astype(o_ref.dtype)


def conv_block_forward_nlc(x_nlc, w1, b1, bn1, w2, b2, bn2, *,
                           tile_l=256, compute_dtype=jnp.bfloat16):
    """Channel-last entry point.  x_nlc: (B, L, C) float32.  Returns (B, L, C).

    w1, w2: (C, C, K) torch Conv1d weights; b1, b2: (C,) biases.
    bn1, bn2: tuples (gamma, beta, running_mean, running_var, eps) — eval-mode stats.
    """
    gamma1, beta1, mean1, var1, eps1 = bn1
    gamma2, beta2, mean2, var2, eps2 = bn2

    B, L, C = x_nlc.shape
    O, Ci, K = w1.shape
    assert O == C and Ci == C, "residual add requires in_channels == out_channels"
    assert w2.shape == (C, C, K) and K % 2 == 1
    pad = K // 2
    H = K - 1
    f32 = jnp.float32

    # ---- fold eval-mode BatchNorm into the conv weights / per-channel shift ----
    s1 = gamma1 * jax.lax.rsqrt(var1 + eps1)
    s2 = gamma2 * jax.lax.rsqrt(var2 + eps2)
    t1 = (b1 - mean1) * s1 + beta1
    t2 = (b2 - mean2) * s2 + beta2

    def pack_w(w, s):   # (O, C, K) -> (K*C, O) with W[k*C + c, o] = w[o, c, k] * s[o]
        wf = (w * s[:, None, None]).astype(f32)
        return jnp.transpose(wf, (2, 1, 0)).reshape(K * C, C).astype(compute_dtype)

    W1, W2 = pack_w(w1, s1), pack_w(w2, s2)
    T1 = t1.astype(f32).reshape(1, C)
    T2 = t2.astype(f32).reshape(1, C)

    # ---- L tiling (multiple of 8; multiples of 128 are best) ----
    TL = min(tile_l, L)
    if TL < L:
        TL = max(8, (TL // 8) * 8)
    assert TL >= H
    NT = -(-L // TL)
    Lp = NT * TL
    x_p = x_nlc.astype(f32)
    if Lp != L:
        x_p = jnp.pad(x_p, ((0, 0), (0, Lp - L), (0, 0)))

    # ---- tiny per-tile halo side array (2H rows/tile); zeros == sequence boundary ----
    x_r = x_p.reshape(B, NT, TL, C)
    zrows = jnp.zeros((B, 1, H, C), f32)
    left = jnp.concatenate([zrows, x_r[:, :-1, TL - H:, :]], axis=1)   # (B, NT, H, C)
    right = jnp.concatenate([x_r[:, 1:, :H, :], zrows], axis=1)        # (B, NT, H, C)
    halo = jnp.concatenate([left, right], axis=2)                      # (B, NT, 2H, C)

    kernel = functools.partial(conv_block_kernel, tile_l=TL, ksize=K,
                               seq_len=L, compute_dtype=compute_dtype)
    out = pl.pallas_call(
        kernel,
        out_shape=jax.ShapeDtypeStruct((B, Lp, C), x_nlc.dtype),
        grid_spec=pltpu.PrefetchScalarGridSpec(
            num_scalar_prefetch=0,
            grid=(B, NT),
            in_specs=[
                pl.BlockSpec((1, TL, C), lambda b, i: (b, i, 0)),
                pl.BlockSpec((1, 1, 2 * H, C), lambda b, i: (b, i, 0, 0)),
                pl.BlockSpec((K * C, C), lambda b, i: (0, 0)),
                pl.BlockSpec((1, C), lambda b, i: (0, 0)),
                pl.BlockSpec((K * C, C), lambda b, i: (0, 0)),
                pl.BlockSpec((1, C), lambda b, i: (0, 0)),
            ],
            out_specs=pl.BlockSpec((1, TL, C), lambda b, i: (b, i, 0)),
        ),
        compiler_params=pltpu.CompilerParams(
            dimension_semantics=("parallel", "parallel")),
    )(x_p, halo, W1, T1, W2, T2)

    if Lp != L:
        out = out[:, :L, :]
    return out


def conv_block_forward(x, w1, b1, bn1, w2, b2, bn2, *, tile_l=256,
                       compute_dtype=jnp.bfloat16):
    """PyTorch-layout entry point.  x: (B, C, L) float32.  Returns (B, C, L)."""
    x_nlc = jnp.transpose(x, (0, 2, 1))
    out = conv_block_forward_nlc(x_nlc, w1, b1, bn1, w2, b2, bn2,
                                 tile_l=tile_l, compute_dtype=compute_dtype)
    return jnp.transpose(out, (0, 2, 1))


def reference_forward(x, w1, b1, bn1, w2, b2, bn2):
    """Pure-JAX reference mirroring the PyTorch ConvBlock (eval-mode BN)."""
    def conv(x, w, b):
        y = jax.lax.conv_general_dilated(
            x, w, window_strides=(1,), padding="SAME",
            dimension_numbers=("NCH", "OIH", "NCH"),
            precision=jax.lax.Precision.HIGHEST)
        return y + b[None, :, None]

    def bn(y, p):
        gamma, beta, mean, var, eps = p
        return ((y - mean[None, :, None])
                * (gamma / jnp.sqrt(var + eps))[None, :, None]
                + beta[None, :, None])

    h = jax.nn.relu(bn(conv(x, w1, b1), bn1))
    return jax.nn.relu(bn(conv(h, w2, b2), bn2) + x)


if __name__ == "__main__":
    key = jax.random.PRNGKey(0)
    ks = jax.random.split(key, 13)

    B, C, L, K = 2, 128, 256, 3   # residual requires in_ch == out_ch

    x = jax.random.normal(ks[0], (B, C, L), jnp.float32)
    w1 = jax.random.normal(ks[1], (C, C, K), jnp.float32) * 0.05
    b1 = jax.random.normal(ks[2], (C,), jnp.float32) * 0.1
    w2 = jax.random.normal(ks[3], (C, C, K), jnp.float32) * 0.05
    b2 = jax.random.normal(ks[4], (C,), jnp.float32) * 0.1

    bn1 = (1.0 + 0.1 * jax.random.normal(ks[5], (C,), jnp.float32),   # gamma
           0.1 * jax.random.normal(ks[6], (C,), jnp.float32),         # beta
           0.1 * jax.random.normal(ks[7], (C,), jnp.float32),         # running_mean
           jax.random.uniform(ks[8], (C,), jnp.float32, 0.5, 1.5),    # running_var
           1e-5)
    bn2 = (1.0 + 0.1 * jax.random.normal(ks[9], (C,), jnp.float32),
           0.1 * jax.random.normal(ks[10], (C,), jnp.float32),
           0.1 * jax.random.normal(ks[11], (C,), jnp.float32),
           jax.random.uniform(ks[12], (C,), jnp.float32, 0.5, 1.5),
           1e-5)

    ref = reference_forward(x, w1, b1, bn1, w2, b2, bn2)

    # Strict check of the algorithm (f32 MXU path), tile_l=128 so the multi-tile
    # halo path and the boundary masking are both exercised.
    out_f32 = conv_block_forward(x, w1, b1, bn1, w2, b2, bn2,
                                 tile_l=128, compute_dtype=jnp.float32)
    out_f32 = jax.block_until_ready(out_f32)
    np.testing.assert_allclose(np.asarray(out_f32), np.asarray(ref),
                               rtol=2e-3, atol=2e-3)

    # bf16-MXU fast path (f32 accumulation / f32 epilogue) — looser tolerance.
    out_bf16 = conv_block_forward(x, w1, b1, bn1, w2, b2, bn2,
                                  tile_l=128, compute_dtype=jnp.bfloat16)
    out_bf16 = jax.block_until_ready(out_bf16)
    np.testing.assert_allclose(np.asarray(out_bf16), np.asarray(ref),
                               rtol=4e-2, atol=4e-2)

    print("KERNEL_OK")
</pallas_src>

<mosaic_0001>
module attributes {stable_mosaic.version = 11 : i64} {
  func.func @conv_block_kernel(%arg0: i32, %arg1: i32, %arg2: memref<1x128x128xf32, #tpu.memory_space<vmem>>, %arg3: memref<1x1x4x128xf32, #tpu.memory_space<vmem>>, %arg4: memref<384x128xf32, #tpu.memory_space<vmem>>, %arg5: memref<1x128xf32, #tpu.memory_space<vmem>>, %arg6: memref<384x128xf32, #tpu.memory_space<vmem>>, %arg7: memref<1x128xf32, #tpu.memory_space<vmem>>, %arg8: memref<1x128x128xf32, #tpu.memory_space<vmem>>) attributes {dimension_semantics = [#tpu.dimension_semantics<parallel>, #tpu.dimension_semantics<parallel>], iteration_bounds = array<i64: 2, 2>, scalar_prefetch = 0 : i64, scratch_operands = 0 : i64, tpu.core_type = #tpu.core_type<tc>, window_params = [{transform_indices = @transform_0, window_bounds = array<i64: 1, 128, 128>}, {transform_indices = @transform_1, window_bounds = array<i64: 1, 1, 4, 128>}, {pipeline_mode = #tpu.pipeline_mode<synchronous>, transform_indices = @transform_2, window_bounds = array<i64: 384, 128>}, {pipeline_mode = #tpu.pipeline_mode<synchronous>, transform_indices = @transform_3, window_bounds = array<i64: 1, 128>}, {pipeline_mode = #tpu.pipeline_mode<synchronous>, transform_indices = @transform_4, window_bounds = array<i64: 384, 128>}, {pipeline_mode = #tpu.pipeline_mode<synchronous>, transform_indices = @transform_5, window_bounds = array<i64: 1, 128>}, {transform_indices = @transform_6, window_bounds = array<i64: 1, 128, 128>}]} {
    %c0 = arith.constant 0 : index
    %c0_0 = arith.constant 0 : index
    %c0_1 = arith.constant 0 : index
    %0 = vector.load %arg2[%c0, %c0_0, %c0_1] : memref<1x128x128xf32, #tpu.memory_space<vmem>>, vector<1x128x128xf32>
    %1 = vector.shape_cast %0 : vector<1x128x128xf32> to vector<128x128xf32>
    %c0_2 = arith.constant 0 : index
    %c0_3 = arith.constant 0 : index
    %c0_4 = arith.constant 0 : index
    %c0_5 = arith.constant 0 : index
    %2 = vector.load %arg3[%c0_2, %c0_3, %c0_4, %c0_5] : memref<1x1x4x128xf32, #tpu.memory_space<vmem>>, vector<1x1x4x128xf32>
    %3 = vector.shape_cast %2 : vector<1x1x4x128xf32> to vector<4x128xf32>
    %4 = vector.extract_strided_slice %3 {offsets = [0, 0], sizes = [2, 128], strides = [1, 1]} : vector<4x128xf32> to vector<2x128xf32>
    %5 = vector.extract_strided_slice %3 {offsets = [2, 0], sizes = [2, 128], strides = [1, 1]} : vector<4x128xf32> to vector<2x128xf32>
    %6 = tpu.concatenate %4, %1, %5 in 0 : vector<2x128xf32>, vector<128x128xf32>, vector<2x128xf32> -> vector<132x128xf32>
    %7 = vector.extract_strided_slice %6 {offsets = [0, 0], sizes = [130, 128], strides = [1, 1]} : vector<132x128xf32> to vector<130x128xf32>
    %8 = vector.extract_strided_slice %6 {offsets = [1, 0], sizes = [130, 128], strides = [1, 1]} : vector<132x128xf32> to vector<130x128xf32>
    %9 = vector.extract_strided_slice %6 {offsets = [2, 0], sizes = [130, 128], strides = [1, 1]} : vector<132x128xf32> to vector<130x128xf32>
    %10 = tpu.concatenate %7, %8, %9 in 1 : vector<130x128xf32>, vector<130x128xf32>, vector<130x128xf32> -> vector<130x384xf32>
    %c0_6 = arith.constant 0 : index
    %c0_7 = arith.constant 0 : index
    %11 = vector.load %arg4[%c0_6, %c0_7] : memref<384x128xf32, #tpu.memory_space<vmem>>, vector<384x128xf32>
    %cst = arith.constant dense<0.000000e+00> : vector<130x128xf32>
    %12 = tpu.matmul %10, %11, %cst {dimension_numbers = #tpu.dot_dimension_numbers<[1], [0], [0], [1], [0, 0, 1, 1], [], []>} : vector<130x384xf32>, vector<384x128xf32>, vector<130x128xf32> -> vector<130x128xf32>
    %c0_8 = arith.constant 0 : index
    %c0_9 = arith.constant 0 : index
    %13 = vector.load %arg5[%c0_8, %c0_9] : memref<1x128xf32, #tpu.memory_space<vmem>>, vector<1x128xf32>
    %14 = vector.broadcast %13 : vector<1x128xf32> to vector<130x128xf32>
    %15 = arith.addf %12, %14 : vector<130x128xf32>
    %cst_10 = arith.constant 0.000000e+00 : f32
    %16 = vector.broadcast %cst_10 : f32 to vector<130x128xf32>
    %17 = arith.maximumf %15, %16 : vector<130x128xf32>
    %18 = tpu.iota {dimensions = array<i32: 0>} : vector<130x1xi32>
    %c128_i32 = arith.constant 128 : i32
    %19 = arith.muli %arg1, %c128_i32 : i32
    %c1_i32 = arith.constant 1 : i32
    %20 = arith.subi %19, %c1_i32 : i32
    %21 = vector.broadcast %20 : i32 to vector<130x1xi32>
    %22 = arith.addi %21, %18 : vector<130x1xi32>
    %c0_i32 = arith.constant 0 : i32
    %23 = vector.broadcast %c0_i32 : i32 to vector<130x1xi32>
    %24 = arith.cmpi sge, %22, %23 : vector<130x1xi32>
    %c256_i32 = arith.constant 256 : i32
    %25 = vector.broadcast %c256_i32 : i32 to vector<130x1xi32>
    %26 = arith.cmpi slt, %22, %25 : vector<130x1xi32>
    %27 = arith.andi %24, %26 : vector<130x1xi1>
    %cst_11 = arith.constant 0.000000e+00 : f32
    %28 = vector.shape_cast %27 : vector<130x1xi1> to vector<130x1xi1>
    %29 = vector.broadcast %28 : vector<130x1xi1> to vector<130x128xi1>
    %30 = vector.broadcast %cst_11 : f32 to vector<130x128xf32>
    %31 = arith.select %29, %17, %30 : vector<130x128xi1>, vector<130x128xf32>
    %32 = vector.extract_strided_slice %31 {offsets = [0, 0], sizes = [128, 128], strides = [1, 1]} : vector<130x128xf32> to vector<128x128xf32>
    %33 = vector.extract_strided_slice %31 {offsets = [1, 0], sizes = [128, 128], strides = [1, 1]} : vector<130x128xf32> to vector<128x128xf32>
    %34 = vector.extract_strided_slice %31 {offsets = [2, 0], sizes = [128, 128], strides = [1, 1]} : vector<130x128xf32> to vector<128x128xf32>
    %35 = tpu.concatenate %32, %33, %34 in 1 : vector<128x128xf32>, vector<128x128xf32>, vector<128x128xf32> -> vector<128x384xf32>
    %c0_12 = arith.constant 0 : index
    %c0_13 = arith.constant 0 : index
    %36 = vector.load %arg6[%c0_12, %c0_13] : memref<384x128xf32, #tpu.memory_space<vmem>>, vector<384x128xf32>
    %cst_14 = arith.constant dense<0.000000e+00> : vector<128x128xf32>
    %37 = tpu.matmul %35, %36, %cst_14 {dimension_numbers = #tpu.dot_dimension_numbers<[1], [0], [0], [1], [0, 0, 1, 1], [], []>} : vector<128x384xf32>, vector<384x128xf32>, vector<128x128xf32> -> vector<128x128xf32>
    %c0_15 = arith.constant 0 : index
    %c0_16 = arith.constant 0 : index
    %38 = vector.load %arg7[%c0_15, %c0_16] : memref<1x128xf32, #tpu.memory_space<vmem>>, vector<1x128xf32>
    %39 = vector.broadcast %38 : vector<1x128xf32> to vector<128x128xf32>
    %40 = arith.addf %37, %39 : vector<128x128xf32>
    %41 = arith.addf %40, %1 : vector<128x128xf32>
    %cst_17 = arith.constant 0.000000e+00 : f32
    %42 = vector.broadcast %cst_17 : f32 to vector<128x128xf32>
    %43 = arith.maximumf %41, %42 : vector<128x128xf32>
    %c0_18 = arith.constant 0 : index
    %c0_19 = arith.constant 0 : index
    %c0_20 = arith.constant 0 : index
    %44 = vector.load %arg8[%c0_18, %c0_19, %c0_20] : memref<1x128x128xf32, #tpu.memory_space<vmem>>, vector<1x128x128xf32>
    %45 = vector.shape_cast %44 : vector<1x128x128xf32> to vector<128x128xf32>
    %46 = vector.shape_cast %43 : vector<128x128xf32> to vector<1x128x128xf32>
    tpu.vector_store %arg8[%c0_18, %c0_19, %c0_20], %46 {strides = array<i32>} : memref<1x128x128xf32, #tpu.memory_space<vmem>>, vector<1x128x128xf32>,
    return
  }
  func.func @transform_0(%arg0: i32, %arg1: i32) -> (i32, i32, i32) {
    %c0_i32 = arith.constant 0 : i32
    %c0_i32_0 = arith.constant 0 : i32
    return %arg0, %arg1, %c0_i32 : i32, i32, i32
  }
  func.func @transform_1(%arg0: i32, %arg1: i32) -> (i32, i32, i32, i32) {
    %c0_i32 = arith.constant 0 : i32
    %c0_i32_0 = arith.constant 0 : i32
    %c0_i32_1 = arith.constant 0 : i32
    return %arg0, %arg1, %c0_i32, %c0_i32_0 : i32, i32, i32, i32
  }
  func.func @transform_2(%arg0: i32, %arg1: i32) -> (i32, i32) {
    %c0_i32 = arith.constant 0 : i32
    %c0_i32_0 = arith.constant 0 : i32
    %c0_i32_1 = arith.constant 0 : i32
    return %c0_i32, %c0_i32_0 : i32, i32
  }
  func.func @transform_3(%arg0: i32, %arg1: i32) -> (i32, i32) {
    %c0_i32 = arith.constant 0 : i32
    %c0_i32_0 = arith.constant 0 : i32
    %c0_i32_1 = arith.constant 0 : i32
    return %c0_i32, %c0_i32_0 : i32, i32
  }
  func.func @transform_4(%arg0: i32, %arg1: i32) -> (i32, i32) {
    %c0_i32 = arith.constant 0 : i32
    %c0_i32_0 = arith.constant 0 : i32
    %c0_i32_1 = arith.constant 0 : i32
    return %c0_i32, %c0_i32_0 : i32, i32
  }
  func.func @transform_5(%arg0: i32, %arg1: i32) -> (i32, i32) {
    %c0_i32 = arith.constant 0 : i32
    %c0_i32_0 = arith.constant 0 : i32
    %c0_i32_1 = arith.constant 0 : i32
    return %c0_i32, %c0_i32_0 : i32, i32
  }
  func.func @transform_6(%arg0: i32, %arg1: i32) -> (i32, i32, i32) {
    %c0_i32 = arith.constant 0 : i32
    %c0_i32_0 = arith.constant 0 : i32
    return %arg0, %arg1, %c0_i32 : i32, i32, i32
  }
}

</mosaic_0001>

<bundles_post_ra>
// kernel: tpu_custom_call.1
= control target key start
LH: loop header
LB: loop body
LE: loop exit
PB: predicated region body
PF: predicated region fallthrough
CT: control target
= control target key end

     0   :  { %s2609_s0 = inlined_call_operand.hbm [shape: f32[2,256,128], index: 0, kind: input, shape index: {}]   ;;  %s2610_s1 = inlined_call_operand.hbm [shape: f32[2,2,4,128], index: 1, kind: input, shape index: {}]   ;;  %s2611_s2 = inlined_call_operand.hbm [shape: f32[384,128], index: 2, kind: input, shape index: {}]   ;;  %s2612_s3 = inlined_call_operand.vmem [shape: f32[1,128], index: 3, kind: input, shape index: {}]   ;;  %s2613_s4 = inlined_call_operand.hbm [shape: f32[384,128], index: 4, kind: input, shape index: {}]   ;;  %s2614_s5 = inlined_call_operand.vmem [shape: f32[1,128], index: 5, kind: input, shape index: {}]   ;;  %s2615_s6 = inlined_call_operand.hbm [shape: f32[2,256,128], index: 6, kind: output, shape index: {}]  }
   0x1   :  { %2625 = sst [smem:[#allocation23_spill]] %s2609_s0 }
   0x2   :  { %2626 = sst [smem:[#allocation24_spill]] %s2611_s2 }
   0x3   :  { %2627 = sst [smem:[#allocation25_spill]] %s2613_s4 }
   0x4   :  { %2628 = sst [smem:[#allocation26_spill]] %s2615_s6 }
   0x5   :  { %11 = vsyncpa [#allocation3], 0 }
   0x6   :  { %13 = vsyncpa [#allocation3 + $0x1], 0 }
   0x7   :  { %14 = vsyncpa [#allocation6], 0 }
   0x8   :  { %16 = vsyncpa [#allocation6 + $0x1], 0 }
   0x9   :  { %17 = vsyncpa [#allocation9], 0 }
   0xa   :  { %18 = vsyncpa [#allocation4], 0 }
   0xb   :  { %20 = vsyncpa [#allocation4 + $0x1], 0  ;;  %s2005_s21 = smov 0   ;;  %s2007_s22 = smov 0  }
   0xc   :  { %s2009_s23 = smov 0   ;;  %s2011_s24 = smov 0  }
   0xd   :  { %s2013_s25 = smov 0   ;;  %s2015_s26 = smov 0  }
   0xe   :  { %s2017_s27 = smov 0   ;;  %s2019_s28 = smov 0  }
   0xf LB: > { %2629 = sst [smem:[#allocation16_spill]] %s1934_s21  ;;  %s2046_s29 = sadd.s32 4294967295, %s1962_s28   ;;  %s1962_s28 = sphi %s2019_s28, %s26_s28   ;;  %s1958_s27 = sphi %s2017_s27, %s2662_s27   ;;  %s1954_s26 = sphi %s2015_s26, %s2661_s26   ;;  %s1950_s25 = sphi %s2013_s25, %s2660_s25   ;;  %s1946_s24 = sphi %s2011_s24, %s2659_s24   ;;  %s1942_s23 = sphi %s2009_s23, %s2658_s23   ;;  %s1938_s22 = sphi %s2007_s22, %s2657_s22   ;;  %s1934_s21 = sphi %s2005_s21, %s2656_s21  }
  0x10   : > { %2630 = sst [smem:[#allocation17_spill]] %s1950_s25  ;;  %s1532_s30 = sadd.s32 4294967294, %s1962_s28  }
  0x11   : > { %p60_p0 = scmp.ne.s32.totalorder %s1938_s22, %s1934_s21  ;;  %p61_p1 = scmp.eq.s32.totalorder %s2046_s29, 0 }
  0x12   : > { %p198_p2 = scmp.eq.s32.totalorder %s2046_s29, 3  ;;  %p204_p3 = scmp.eq.s32.totalorder %s1532_s30, 3 }
  0x13   : > { %p2055_p4 = por %p61_p1, %p60_p0  ;;  %p1533_p5 = scmp.ge.s32.totalorder %s1962_s28, 1 }
  0x14   : > { %p2060_p6 = por %p204_p3, %p60_p0  ;;  %p211_p7 = scmp.lt.s32.totalorder %s1962_s28, 5 }
  0x15   : > { %s2634_s2 = sld [smem:[#allocation24_spill]]  ;;  %s1964_s13 = smov [#allocation7]  }
  0x16   : > { %s2632_s8 = scalar_select %p2060_p6, 1, 0 }
  0x17   : > { %p2068_p8 = pnand %p1533_p5, %p211_p7  ;;  %s224_s14 = sshll.u32 %s1964_s13, 4  ;;  %s225_s14 = int_to_ptr.vmem [resolvable:$true] %s224_s14 }
  0x18   : > { %2633 = sst [smem:[#allocation18_spill]] %s2632_s8  ;;  %s2616_s18 = smov 128  }
  0x19   : > { %p1620_p9 = pneg %p2068_p8  ;;  %s2636_s4 = sld [smem:[#allocation25_spill]] }
  0x1a   : > { %s2617_s19 = smov 8   ;;  %s1967_s20 = smov [#allocation8]  }
  0x1b   : > { %s222_s11 = sshll.u32 %s2634_s2, 4  ;;  %p1621_p10 = pnand %p1620_p9, %p61_p1  ;;  %s223_s11 = int_to_ptr.hbm [resolvable:$true] %s222_s11 }
  0x1c   : > { %s241_s30 = sshll.u32 %s1967_s20, 4  ;;  %s35_s9 = sadd.s32 1, %s1954_s26  ;;  %s242_s30 = int_to_ptr.vmem [resolvable:$true] %s241_s30 }
  0x1d   : > { %1623 = dma.hbm_to_vmem [thread:$0]  (!%p1621_p10), %s223_s11, 6144, %s225_s14, [#allocation6], %s2616_s18, %s2616_s18, %s2617_s19  }
  0x1e   : > { %s38_s10 = sadd.s32 1, %s1958_s27  ;;  %p36_p11 = scmp.ge.s32.totalorder %s35_s9, 2 }
  0x1f   : > { %s239_s17 = sshll.u32 %s2636_s4, 4  ;;  %s47_s13 = sadd.s32 1, %s1942_s23  ;;  %s240_s17 = int_to_ptr.hbm [resolvable:$true] %s239_s17 }
  0x20   : > { %1626 = dma.hbm_to_vmem [thread:$0]  (!%p1621_p10), %s240_s17, 6144, %s242_s30, [#allocation9], %s2616_s18, %s2616_s18, %s2617_s19  }
  0x21   : > { %p54_p12 = scmp.ne.s32.totalorder %s1942_s23, %s1938_s22  ;;  %p55_p13 = scmp.eq.s32.totalorder %s1962_s28, 0 }
  0x22   : > { %s2664_s9 = smov (%p36_p11, %s35_s9), 0  ;;  %s2666_s10 = smov (!%p36_p11, %s38_s10), %s1958_s27 }
  0x23   : > { %2637 = sst [smem:[#allocation19_spill]] %s2664_s9  ;;  %s43_s11 = ssub.s32 %s1954_s26, %s2664_s9 }
  0x24   : > { %p2096_p0 = por %p55_p13, %p54_p12  ;;  %p40_p3 = scmp.ge.s32.totalorder %s2666_s10, 2 }
  0x25   : > { %p2102_p5 = por %p198_p2, %p54_p12  ;;  %p1640_p7 = scmp.lt.s32.totalorder %s1962_s28, 4 }
  0x26   : > { %s258_s16 = sand.u32 1, %s1942_s23   ;;  %s2668_s10 = smov (%p40_p3, %s2666_s10), 0 }
  0x27   : > { %s2639_s15 = scalar_select %p2102_p5, 1, 0 }
  0x28   : > { %2641 = sst [smem:[#allocation21_spill]] %s2668_s10  ;;  %s1537_s17 = sshll.u32 %s258_s16, 7 }
  0x29   : > { %2640 = sst [smem:[#allocation20_spill]] %s2639_s15  ;;  %s42_s20 = ssub.s32 %s1958_s27, %s2668_s10 }
  0x2a   : > { %s44_s30 = sor.u32 %s43_s11, %s42_s20  ;;  %s1538_s18 = sshll.u32 %s1954_s26, 4 }
  0x2b   : > { %p45_p9 = scmp.eq.s32.totalorder %s44_s30, 0  ;;  %s1539_s19 = sshll.u32 %s1958_s27, 5 }
  0x2c   : > { %s267_s2 = sadd.s32 %s1539_s19, %s1538_s18  ;;  %s262_s4 = scalar_lea.vmem [#allocation2], %s1537_s17 }
  0x2d   : > { %s272_s9 = sshll.u32 %s262_s4, 4  ;;  %s1540_s21 = sshll.u32 %s267_s2, 3  ;;  %s273_s9 = int_to_ptr.vmem [resolvable:$true] %s272_s9 }
  0x2e   : > { %s2115_s8 = scalar_select %p45_p9, %s1942_s23, %s47_s13  }
  0x2f   : > { %s2643_s0 = sld [smem:[#allocation23_spill]]  ;;  %p2124_p2 = pnand %p1640_p7, %p2096_p0 }
  0x30   : > { %2642 = sst [smem:[#allocation22_spill]] %s2115_s8  ;;  %s259_s18 = scalar_lea.sflag [#allocation3], %s258_s16 }
  0x31   : > { %s2645_s4 = smov 8   ;;  %s2646_s19 = smov 128  }
  0x32   : > { %s282_s2 = sand.u32 1, %s1962_s28   ;;  %s1541_s13 = sshll.u32 %s258_s16, 2 }
  0x33   : > { %s1542_s6 = sshll.u32 %s1958_s27, 1  ;;  %s286_s14 = scalar_lea.vmem [#allocation5], %s1541_s13 }
  0x34   : > { %s296_s15 = sshll.u32 %s286_s14, 4  ;;  %s283_s8 = scalar_lea.sflag [#allocation6], %s282_s2  ;;  %s297_s15 = int_to_ptr.vmem [resolvable:$true] %s296_s15 }
  0x35   : > { %s269_s25 = scalar_lea.hbm %s2643_s0, %s1540_s21  ;;  %s290_s21 = sadd.s32 %s1954_s26, %s1542_s6 }
  0x36   : > { %s270_s20 = sshll.u32 %s269_s25, 4  ;;  %s1543_s17 = sshll.u32 %s290_s21, 2  ;;  %s271_s20 = int_to_ptr.hbm [resolvable:$true] %s270_s20 }
  0x37   : > { %1630 = dma.hbm_to_vmem [thread:$0]  (!%p2124_p2), %s271_s20, 2048, %s273_s9, %s259_s18, %s2646_s19, %s2646_s19, %s2645_s4  }
  0x38   : > { %s292_s10 = scalar_lea.hbm %s2610_s1, %s1543_s17  ;;  %305 = sbr.rel (%p2068_p8) target bundleno = 689 (0x2b1), region = 44 }
  0x39   : > { %s294_s25 = sshll.u32 %s292_s10, 4  ;;  %s2144_s9 = sand.u32 (!%p2068_p8), 1, %s1938_s22   ;;  %s295_s25 = int_to_ptr.hbm [resolvable:$true] %s294_s25 }
  0x3a   : > { %1633 = dma.hbm_to_vmem [thread:$0]  (!%p2124_p2), %s295_s25, 64, %s297_s15, %s283_s8  }
  0x3b   : > { %s1545_s16 = sshll.u32 (!%p2068_p8), %s2144_s9, 7  ;;  %s308_s20 = scalar_lea.sflag (!%p2068_p8), [#allocation3], %s2144_s9 }
  0x3c   : > { %s2150_s0 = scalar_lea.vmem (!%p2068_p8), [#allocation2], %s1545_s16 }
  0x3d   : > { %1913 = dma.done.wait (%p2055_p4), %s308_s20, 2048  }
  0x3e   : > { %1915 = vsyncadd (%p2055_p4), %s308_s20, 4294965248  ;;  %s317_s8 = sand.u32 1, %s2046_s29   ;;  %s1546_s12 = sshll.u32 %s2144_s9, 2 }
  0x3f   : > { %s318_s10 = scalar_lea.sflag [#allocation6], %s317_s8  ;;  %s2158_s11 = scalar_lea.vmem [#allocation5], %s1546_s12 }
  0x40   : > { %1917 = dma.done.wait (%p2055_p4), %s318_s10, 64  }
  0x41   : > { %1919 = vsyncadd (%p2055_p4), %s318_s10, 4294967232 }
  0x42   : > { %1921 = dma.done.wait (%p61_p1), [#allocation6], 6144  }
  0x43   : > { %1923 = vsyncadd (%p61_p1), [#allocation6], 4294961152 }
  0x44   : > { %1925 = dma.done.wait (%p61_p1), [#allocation9], 6144  }
  0x45   : > { %1927 = vsyncadd (%p61_p1), [#allocation9], 4294961152  ;;  %v571_v0 = vld [vmem:[#allocation7 + $0x78] sm:$0xff]  ;;  %v570_v1 = vld [vmem:[#allocation7 + $0x70] sm:$0xff]  ;;  %vm401_vm0 = vcmask 1041408   ;;  %vm505_vm1 = vcmask 1045504  }
  0x46   : > { %1574 = vmatpush.msra.mxu1 %v571_v0  ;;  %608 = vmatpush.msra.mxu0 %v571_v0  ;;  %v569_v2 = vld [vmem:[#allocation7 + $0x68] sm:$0xff]  ;;  %v568_v3 = vld [vmem:[#allocation7 + $0x60] sm:$0xff]  ;;  %v567_v4 = vld [vmem:[#allocation7 + $0x58] sm:$0xff]  ;;  %vm454_vm2 = vcmask 1046528   ;;  %s1550_s29 = sshll.u32 %s1946_s24, 7  ;;  %s2508_s13 = scalar_lea.vmem [#allocation10], %s1545_s16 }
  0x47   : > { %v566_v5 = vld [vmem:[#allocation7 + $0x50] sm:$0xff]  ;;  %v565_v6 = vld [vmem:[#allocation7 + $0x48] sm:$0xff]  ;;  %v564_v7 = vld [vmem:[#allocation7 + $0x40] sm:$0xff]  ;;  %s1551_s7 = sadd.s32 4294967295, %s1550_s29  ;;  %s2647_s6 = sld [smem:[#allocation17_spill]] }
  0x48   : > { %1575 = vmatpush.msra.mxu1 %v570_v1  ;;  %609 = vmatpush.msra.mxu0 %v570_v1  ;;  %v563_v8 = vld [vmem:[#allocation7 + $0x38] sm:$0xff]  ;;  %v562_v9 = vld [vmem:[#allocation7 + $0x30] sm:$0xff]  ;;  %v561_v10 = vld [vmem:[#allocation7 + $0x28] sm:$0xff]  ;;  %s1569_s21 = sshll.u32 %s1946_s24, 4  ;;  %s2648_s25 = sld [smem:[#allocation26_spill]] }
  0x49   : > { %v560_v11 = vld [vmem:[#allocation7 + $0x20] sm:$0xff]  ;;  %v559_v12 = vld [vmem:[#allocation7 + $0x18] sm:$0xff]  ;;  %v558_v15 = vld [vmem:[#allocation7 + $0x10] sm:$0xff]  ;;  %s1394_s12 = sshll.u32 %s2508_s13, 4  ;;  %s1395_s12 = int_to_ptr.vmem [resolvable:$true] %s1394_s12 }
  0x4a   : > { %1576 = vmatpush.msra.mxu1 %v569_v2  ;;  %610 = vmatpush.msra.mxu0 %v569_v2  ;;  %v2173_v13 = vld [vmem:[%s2150_s0 + $0x40] sm:$0xff]  ;;  %v377_v14 = vld [vmem:[%s2150_s0 + $0x48] sm:$0xff]  ;;  %v602_v19 = vld [vmem:[#allocation7 + $0x170] sm:$0xff] }
  0x4b   : > { %v603_v16 = vld [vmem:[#allocation7 + $0x178] sm:$0xff]  ;;  %v417_v17 = vrot.slane %v2173_v13, 6  ;;  %v419_v18 = vrot.slane %v377_v14, 6  ;;  %v557_v20 = vld [vmem:[#allocation7 + $0x8] sm:$0xff]  ;;  %v556_v21 = vld [vmem:[#allocation7] sm:$0xff] }
  0x4c   : > { %1577 = vmatpush.msra.mxu1 %v568_v3  ;;  %611 = vmatpush.msra.mxu0 %v568_v3  ;;  %v587_v23 = vld [vmem:[#allocation7 + $0xf8] sm:$0xff]  ;;  %v378_v24 = vld [vmem:[%s2150_s0 + $0x50] sm:$0xff]  ;;  %v586_v25 = vld [vmem:[#allocation7 + $0xf0] sm:$0xff] }
  0x4d   : > { %744 = vmatpush.msra.mxu2 %v603_v16  ;;  %v2180_v22 = vsel %vm401_vm0, %v417_v17, %v419_v18  ;;  %v601_v26 = vld [vmem:[#allocation7 + $0x168] sm:$0xff]  ;;  %v600_v27 = vld [vmem:[#allocation7 + $0x160] sm:$0xff]  ;;  %v421_v28 = vrot.slane %v378_v24, 6  ;;  %v599_v30 = vld [vmem:[#allocation7 + $0x158] sm:$0xff]  ;;  %s1570_s14 = sshll.u32 %s2647_s6, 5 }
  0x4e   : > { %1578 = vmatpush.msra.mxu1 %v567_v4  ;;  %612 = vmatpush.msra.mxu0 %v567_v4  ;;  %v585_v29 = vld [vmem:[#allocation7 + $0xe8] sm:$0xff]  ;;  %v584_v31 = vld [vmem:[#allocation7 + $0xe0] sm:$0xff]  ;;  %v598_v32 = vld [vmem:[#allocation7 + $0x150] sm:$0xff]  ;;  %s1391_s15 = sadd.s32 %s1570_s14, %s1569_s21  ;;  %s2649_s16 = smov %s2648_s25 }
  0x4f   : > { %745 = vmatpush.msra.mxu2 %v602_v19  ;;  %v2185_v33 = vsel %vm401_vm0, %v419_v18, %v421_v28  ;;  %v379_v34 = vld [vmem:[%s2150_s0 + $0x58] sm:$0xff]  ;;  %v583_v35 = vld [vmem:[#allocation7 + $0xd8] sm:$0xff]  ;;  %v597_v37 = vld [vmem:[#allocation7 + $0x148] sm:$0xff]  ;;  %s1571_s17 = sshll.u32 %s1391_s15, 3  ;;  %s1872_s19 = scalar_lea.hbm %s2649_s16, 512 }
  0x50   : > { %1579 = vmatpush.msra.mxu1 %v566_v5  ;;  %613 = vmatpush.msra.mxu0 %v566_v5  ;;  %v582_v36 = vld [vmem:[#allocation7 + $0xd0] sm:$0xff]  ;;  %v596_v38 = vld [vmem:[#allocation7 + $0x140] sm:$0xff]  ;;  %v423_v39 = vrot.slane %v379_v34, 6  ;;  %v581_v40 = vld [vmem:[#allocation7 + $0xc8] sm:$0xff]  ;;  %s1393_s20 = scalar_lea.hbm %s2648_s25, %s1571_s17 }
  0x51   : > { %746 = vmatpush.msra.mxu2 %v601_v26  ;;  %v595_v41 = vld [vmem:[#allocation7 + $0x138] sm:$0xff]  ;;  %v580_v42 = vld [vmem:[#allocation7 + $0xc0] sm:$0xff]  ;;  %v594_v43 = vld [vmem:[#allocation7 + $0x130] sm:$0xff]  ;;  %s1396_s10 = sshll.u32 %s1393_s20, 4  ;;  %s1397_s10 = int_to_ptr.hbm [resolvable:$true] %s1396_s10 }
  0x52   : > { %1580 = vmatpush.msra.mxu1 %v565_v6  ;;  %614 = vmatpush.msra.mxu0 %v565_v6  ;;  %v2190_v44 = vsel %vm401_vm0, %v421_v28, %v423_v39  ;;  %v380_v45 = vld [vmem:[%s2150_s0 + $0x60] sm:$0xff]  ;;  %v578_v47 = vld [vmem:[#allocation7 + $0xb0] sm:$0xff]  ;;  %v593_v48 = vld [vmem:[#allocation7 + $0x128] sm:$0xff]  ;;  %s1866_s29 = sshra.s32 %s1397_s10, 4  ;;  %s1867_s29 = int_to_ptr.hbm [resolvable:$true] %s1866_s29 }
  0x53   : > { %747 = vmatpush.msra.mxu2 %v600_v27  ;;  %v579_v46 = vld [vmem:[#allocation7 + $0xb8] sm:$0xff]  ;;  %v592_v49 = vld [vmem:[#allocation7 + $0x120] sm:$0xff]  ;;  %v425_v50 = vrot.slane %v380_v45, 6  ;;  %v577_v51 = vld [vmem:[#allocation7 + $0xa8] sm:$0xff]  ;;  %p1873_p10 = scmp.lt.s32.totalorder %s1867_s29, %s2649_s16 }
  0x54   : > { %1581 = vmatpush.msra.mxu1 %v564_v7  ;;  %615 = vmatpush.msra.mxu0 %v564_v7  ;;  %v591_v52 = vld [vmem:[#allocation7 + $0x118] sm:$0xff]  ;;  %v576_v56 = vld [vmem:[#allocation7 + $0xa0] sm:$0xff]  ;;  %v590_v57 = vld [vmem:[#allocation7 + $0x110] sm:$0xff] }
  0x55   : > { %748 = vmatpush.msra.mxu2 %v599_v30  ;;  %v368_v53 = vld [vmem:[%s2150_s0] sm:$0xff]  ;;  %v2199_v58 = vsel %vm401_vm0, %v423_v39, %v425_v50  ;;  %v369_v60 = vld [vmem:[%s2150_s0 + $0x8] sm:$0xff]  ;;  %v574_v0 = vld [vmem:[#allocation7 + $0x90] sm:$0xff] }
  0x56   : > { %1582 = vmatpush.msra.mxu1 %v563_v8  ;;  %616 = vmatpush.msra.mxu0 %v563_v8  ;;  %v2196_v54 = vld [vmem:[%s2158_s11] sm:$0xf]  ;;  %v402_v55 = vrot.slane %v368_v53, 6  ;;  %v381_v61 = vld [vmem:[%s2150_s0 + $0x68] sm:$0xff]  ;;  %v403_v63 = vrot.slane %v369_v60, 6  ;;  %v589_v1 = vld [vmem:[#allocation7 + $0x108] sm:$0xff] }
  0x57   : > { %749 = vmatpush.msra.mxu2 %v598_v32  ;;  %v575_v62 = vld [vmem:[#allocation7 + $0x98] sm:$0xff]  ;;  %v588_v2 = vld [vmem:[#allocation7 + $0x100] sm:$0xff]  ;;  %v427_v5 = vrot.slane %v381_v61, 6  ;;  %v573_v7 = vld [vmem:[#allocation7 + $0x88] sm:$0xff]  ;;  %s1380_s11 = scalar_lea.sflag [#allocation4], %s2144_s9 }
  0x58   : > { %1583 = vmatpush.msra.mxu1 %v562_v9  ;;  %617 = vmatpush.msra.mxu0 %v562_v9  ;;  %v2203_v59 = vsel %vm401_vm0, %v2196_v54, %v402_v55  ;;  %v2210_v3 = vsel %vm401_vm0, %v402_v55, %v403_v63  ;;  %v572_v9 = vld [vmem:[#allocation7 + $0x80] sm:$0xff]  ;;  %v372_v30 = vld [vmem:[%s2150_s0 + $0x20] sm:$0xff]  ;;  %v375_v53 = vld [vmem:[%s2150_s0 + $0x38] sm:$0xff] }
  0x59   : > { %750 = vmatpush.msra.mxu2 %v597_v37  ;;  %v506_v4 = vrot.slane %v2203_v59, 2  ;;  %v507_v6 = vrot.slane %v2210_v3, 2  ;;  %v373_v37 = vld [vmem:[%s2150_s0 + $0x28] sm:$0xff] }
  0x5a   : > { %1584 = vmatpush.msra.mxu1 %v561_v10  ;;  %618 = vmatpush.msra.mxu0 %v561_v10  ;;  %v2216_v10 = vsel %vm401_vm0, %v425_v50, %v427_v5 }
  0x5b   : > { %751 = vmatpush.msra.mxu2 %v596_v38  ;;  %v508_v8 = vsel %vm505_vm1, %v506_v4, %v507_v6  ;;  %v411_v38 = vrot.slane %v373_v37, 6  ;;  %v1099_v37 = vld [vmem:[#allocation8 + $0x78] sm:$0xff] }
  0x5c   : > { %1585 = vmatpush.msra.mxu1 %v560_v11  ;;  %619 = vmatpush.msra.mxu0 %v560_v11  ;;  %v370_v11 = vld [vmem:[%s2150_s0 + $0x10] sm:$0xff] }
  0x5d   : > { %752 = vmatpush.msra.mxu2 %v595_v41  ;;  %v405_v14 = vrot.slane %v370_v11, 6  ;;  %v456_v41 = vrot.slane %v2210_v3, 1  ;;  %1590 = vmatpush.msra.mxu3 %v1099_v37 }
  0x5e   : > { %1586 = vmatpush.msra.mxu1 %v559_v12  ;;  %620 = vmatpush.msra.mxu0 %v559_v12  ;;  %v382_v12 = vld [vmem:[%s2150_s0 + $0x70] sm:$0xff] }
  0x5f   : > { %753 = vmatpush.msra.mxu2 %v594_v43  ;;  %v429_v16 = vrot.slane %v382_v12, 6 }
  0x60   : > { %1587 = vmatpush.msra.mxu1 %v558_v15  ;;  %621 = vmatpush.msra.mxu0 %v558_v15  ;;  %v406_v15 = vsel %vm401_vm0, %v403_v63, %v405_v14 }
  0x61   : > { %754 = vmatpush.msra.mxu2 %v593_v48  ;;  %v509_v18 = vrot.slane %v406_v15, 2 }
  0x62   : > { %1588 = vmatpush.msra.mxu1 %v557_v20  ;;  %622 = vmatpush.msra.mxu0 %v557_v20  ;;  %v2225_v20 = vsel %vm401_vm0, %v427_v5, %v429_v16  ;;  %v525_v5 = vrot.slane %v2185_v33, 2 }
  0x63   : > { %755 = vmatpush.msra.mxu2 %v592_v49  ;;  %v510_v19 = vsel %vm505_vm1, %v507_v6, %v509_v18  ;;  %v458_v49 = vrot.slane %v406_v15, 1 }
  0x64   : > { %1589 = vmatpush.msra.mxu1 %v556_v21  ;;  %623 = vmatpush.msra.mxu0 %v556_v21  ;;  %v371_v21 = vld [vmem:[%s2150_s0 + $0x18] sm:$0xff] }
  0x65   : > { %651 = vmatmul.f32.vlgmr.msra.gmra.mxu1 %v2180_v22  ;;  %756 = vmatpush.msra.mxu2 %v591_v52  ;;  %v407_v24 = vrot.slane %v371_v21, 6  ;;  %v459_v52 = vsel %vm454_vm2, %v456_v41, %v458_v49 }
  0x66   : > { %676 = vmatpush.msrb.mxu1 %v587_v23  ;;  %624 = vmatmul.f32.vlgmr.msra.gmra.mxu0 %v2203_v59  ;;  %v383_v23 = vld [vmem:[%s2150_s0 + $0x78] sm:$0xff] }
  0x67   : > { %757 = vmatpush.msra.mxu2 %v590_v57  ;;  %v431_v26 = vrot.slane %v383_v23, 6  ;;  %v478_v23 = vrot.slane %v2199_v58, 1 }
  0x68   : > { %677 = vmatpush.msrb.mxu1 %v586_v25  ;;  %v408_v25 = vsel %vm401_vm0, %v405_v14, %v407_v24 }
  0x69   : > { %758 = vmatpush.msra.mxu2 %v589_v1  ;;  %v511_v27 = vrot.slane %v408_v25, 2  ;;  %v523_v1 = vrot.slane %v2180_v22, 2 }
  0x6a   : > { %678 = vmatpush.msrb.mxu1 %v585_v29  ;;  %v2233_v29 = vsel %vm401_vm0, %v429_v16, %v431_v26  ;;  %v476_v16 = vrot.slane %v2190_v44, 1 }
  0x6b   : > { %759 = vmatpush.msra.mxu2 %v588_v2  ;;  %v512_v28 = vsel %vm505_vm1, %v509_v18, %v511_v27  ;;  %v529_v18 = vrot.slane %v2199_v58, 2 }
  0x6c   : > { %679 = vmatpush.msrb.mxu1 %v584_v31  ;;  %760 = vmatmul.f32.vlgmr.msra.gmra.mxu2 %v508_v8  ;;  %v409_v31 = vrot.slane %v372_v30, 6  ;;  %v472_v8 = vrot.slane %v2180_v22, 1 }
  0x6d   : > { %654 = vmatmul.f32.gmra.mxu1 %v2185_v33  ;;  %1136 = vmatpush.msrb.mxu2 %v1099_v37 }
  0x6e   : > { %680 = vmatpush.msrb.mxu1 %v583_v35  ;;  %627 = vmatmul.f32.gmra.mxu0 %v2210_v3  ;;  %v410_v32 = vsel %vm401_vm0, %v407_v24, %v409_v31  ;;  %v412_v39 = vsel %vm401_vm0, %v409_v31, %v411_v38  ;;  %v531_v24 = vrot.slane %v2216_v10, 2 }
  0x6f   : > { %v513_v34 = vrot.slane %v410_v32, 2  ;;  %v464_v3 = vrot.slane %v412_v39, 1 }
  0x70   : > { %681 = vmatpush.msrb.mxu1 %v582_v36  ;;  %v2241_v36 = vsel %vm401_vm0, %v431_v26, %v2196_v54  ;;  %v415_v54 = vrot.slane %v375_v53, 6  ;;  %v532_v26 = vsel %vm505_vm1, %v529_v18, %v531_v24 }
  0x71   : > { %v514_v35 = vsel %vm505_vm1, %v511_v27, %v513_v34  ;;  %v480_v27 = vrot.slane %v2216_v10, 1  ;;  %v486_v53 = vrot.slane %v2241_v36, 1 }
  0x72   : > { %682 = vmatpush.msrb.mxu1 %v581_v40  ;;  %v455_v40 = vrot.slane %v2203_v59, 1  ;;  %v418_v61 = vsel %vm401_vm0, %v415_v54, %v417_v17  ;;  %v526_v17 = vsel %vm505_vm1, %v523_v1, %v525_v5 }
  0x73   : > { %v521_v63 = vrot.slane %v418_v61, 2  ;;  %v470_v21 = vrot.slane %v418_v61, 1  ;;  %v2292_v31 = vsel %vm454_vm2, %v478_v23, %v480_v27 }
  0x74   : > { %683 = vmatpush.msrb.mxu1 %v580_v42  ;;  %763 = vmatmul.f32.gmra.mxu2 %v510_v19  ;;  %v515_v42 = vrot.slane %v412_v39, 2  ;;  %v457_v45 = vsel %vm454_vm2, %v455_v40, %v456_v41  ;;  %v1097_v40 = vld [vmem:[#allocation8 + $0x68] sm:$0xff]  ;;  %v1096_v41 = vld [vmem:[#allocation8 + $0x60] sm:$0xff] }
  0x75   : > { %657 = vmatmul.f32.gmra.mxu1 %v2190_v44  ;;  %v524_v4 = vsel %vm505_vm1, %v521_v63, %v523_v1  ;;  %v1087_v1 = vld [vmem:[#allocation8 + $0x18] sm:$0xff] }
  0x76   : > { %684 = vmatpush.msrb.mxu1 %v579_v46  ;;  %630 = vmatmul.f32.gmra.mxu0 %v406_v15  ;;  %v516_v43 = vsel %vm505_vm1, %v513_v34, %v515_v42  ;;  %v374_v46 = vld [vmem:[%s2150_s0 + $0x30] sm:$0xff]  ;;  %v482_v34 = vrot.slane %v2225_v20, 1 }
  0x78   : > { %685 = vmatpush.msrb.mxu1 %v578_v47  ;;  %v413_v47 = vrot.slane %v374_v46, 6 }
  0x7a   : > { %686 = vmatpush.msrb.mxu1 %v577_v51  ;;  %v414_v48 = vsel %vm401_vm0, %v411_v38, %v413_v47  ;;  %v416_v55 = vsel %vm401_vm0, %v413_v47, %v415_v54  ;;  %v1098_v38 = vld [vmem:[#allocation8 + $0x70] sm:$0xff]  ;;  %v1091_v54 = vld [vmem:[#allocation8 + $0x38] sm:$0xff] }
  0x7b   : > { %v517_v50 = vrot.slane %v414_v48, 2  ;;  %v519_v57 = vrot.slane %v416_v55, 2  ;;  %v466_v6 = vrot.slane %v414_v48, 1  ;;  %v468_v15 = vrot.slane %v416_v55, 1  ;;  %1137 = vmatpush.msrb.mxu2 %v1098_v38  ;;  %1591 = vmatpush.msra.mxu3 %v1098_v38  ;;  %v1094_v47 = vld [vmem:[#allocation8 + $0x50] sm:$0xff] }
  0x7c   : > { %687 = vmatpush.msrb.mxu1 %v576_v56  ;;  %766 = vmatmul.f32.gmra.mxu2 %v512_v28  ;;  %v460_v56 = vrot.slane %v408_v25, 1  ;;  %v533_v28 = vrot.slane %v2225_v20, 2 }
  0x7d   : > { %660 = vmatmul.f32.gmra.mxu1 %v2199_v58  ;;  %v518_v51 = vsel %vm505_vm1, %v515_v42, %v517_v50  ;;  %v520_v59 = vsel %vm505_vm1, %v517_v50, %v519_v57  ;;  %v467_v11 = vsel %vm454_vm2, %v464_v3, %v466_v6  ;;  %v473_v58 = vsel %vm454_vm2, %v470_v21, %v472_v8  ;;  %v1131_v50 = vld [vmem:[#allocation8 + $0x178] sm:$0xff] }
  0x7e   : > { %688 = vmatpush.msrb.mxu1 %v575_v62  ;;  %633 = vmatmul.f32.gmra.mxu0 %v408_v25  ;;  %v461_v60 = vsel %vm454_vm2, %v458_v49, %v460_v56  ;;  %v462_v62 = vrot.slane %v410_v32, 1  ;;  %v471_v25 = vsel %vm454_vm2, %v468_v15, %v470_v21  ;;  %v1093_v49 = vld [vmem:[#allocation8 + $0x48] sm:$0xff] }
  0x7f   : > { %1138 = vmatpush.msrb.mxu2 %v1097_v40  ;;  %1592 = vmatpush.msra.mxu3 %v1097_v40 }
  0x80   : > { %689 = vmatpush.msrb.mxu1 %v574_v0  ;;  %v522_v0 = vsel %vm505_vm1, %v519_v57, %v521_v63  ;;  %v463_v2 = vsel %vm454_vm2, %v460_v56, %v462_v62  ;;  %v465_v13 = vsel %vm454_vm2, %v462_v62, %v464_v3  ;;  %1266 = vmatpush.msrb.mxu0 %v1131_v50  ;;  %v1090_v57 = vld [vmem:[#allocation8 + $0x30] sm:$0xff]  ;;  %v1127_v62 = vld [vmem:[#allocation8 + $0x158] sm:$0xff]  ;;  %v1088_v63 = vld [vmem:[#allocation8 + $0x20] sm:$0xff] }
  0x81   : > { %1139 = vmatpush.msrb.mxu2 %v1096_v41  ;;  %1593 = vmatpush.msra.mxu3 %v1096_v41 }
  0x82   : > { %690 = vmatpush.msrb.mxu1 %v573_v7  ;;  %v474_v7 = vrot.slane %v2185_v33, 1  ;;  %v469_v33 = vsel %vm454_vm2, %v466_v6, %v468_v15  ;;  %v1123_v6 = vld [vmem:[#allocation8 + $0x138] sm:$0xff] }
  0x84   : > { %691 = vmatpush.msrb.mxu1 %v572_v9  ;;  %769 = vmatmul.f32.gmra.mxu2 %v514_v35  ;;  %v527_v9 = vrot.slane %v2190_v44, 2  ;;  %v475_v12 = vsel %vm454_vm2, %v472_v8, %v474_v7  ;;  %v477_v22 = vsel %vm454_vm2, %v474_v7, %v476_v16  ;;  %v2283_v44 = vsel %vm454_vm2, %v476_v16, %v478_v23  ;;  %v1084_v7 = vld [vmem:[#allocation8] sm:$0xff]  ;;  %v1122_v8 = vld [vmem:[#allocation8 + $0x130] sm:$0xff]  ;;  %v1119_v16 = vld [vmem:[#allocation8 + $0x118] sm:$0xff] }
  0x85   : > { %663 = vmatmul.f32.gmra.mxu1 %v2216_v10  ;;  %v535_v35 = vrot.slane %v2233_v29, 2 }
  0x86   : > { %636 = vmatmul.f32.gmra.mxu0 %v410_v32  ;;  %v528_v14 = vsel %vm505_vm1, %v525_v5, %v527_v9  ;;  %v530_v19 = vsel %vm505_vm1, %v527_v9, %v529_v18  ;;  %v534_v32 = vsel %vm505_vm1, %v531_v24, %v533_v28  ;;  %v1124_v5 = vld [vmem:[#allocation8 + $0x140] sm:$0xff]  ;;  %v1121_v9 = vld [vmem:[#allocation8 + $0x128] sm:$0xff]  ;;  %v1118_v18 = vld [vmem:[#allocation8 + $0x110] sm:$0xff]  ;;  %v829_v24 = vlaneseq }
  0x87   : > { %v536_v42 = vsel %vm505_vm1, %v533_v28, %v535_v35 }
  0x8c   : > { %772 = vmatmul.f32.gmra.mxu2 %v516_v43  ;;  %v537_v43 = vrot.slane %v2241_v36, 2 }
  0x8d   : > { %666 = vmatmul.f32.gmra.mxu1 %v2225_v20  ;;  %v484_v20 = vrot.slane %v2233_v29, 1 }
  0x8e   : > { %639 = vmatmul.f32.gmra.mxu0 %v412_v39  ;;  %v2300_v39 = vsel %vm454_vm2, %v480_v27, %v482_v34  ;;  %v2339_v27 = vld [vmem:[%s2612_s3] ss:$0 sm:$0xff] }
  0x94   : > { %775 = vmatmul.f32.gmra.mxu2 %v518_v51  ;;  %v538_v51 = vsel %vm505_vm1, %v535_v35, %v537_v43 }
  0x95   : > { %669 = vmatmul.f32.gmra.mxu1 %v2233_v29  ;;  %v1092_v29 = vld [vmem:[#allocation8 + $0x40] sm:$0xff] }
  0x96   : > { %642 = vmatmul.f32.gmra.mxu0 %v414_v48  ;;  %v2308_v48 = vsel %vm454_vm2, %v482_v34, %v484_v20 }
  0x9c   : > { %778 = vmatmul.f32.gmra.mxu2 %v520_v59  ;;  %v1128_v59 = vld [vmem:[#allocation8 + $0x160] sm:$0xff] }
  0x9d   : > { %672 = vmatmul.f32.gmra.mxu1 %v2241_v36 }
  0x9e   : > { %645 = vmatmul.f32.gmra.mxu0 %v416_v55  ;;  %v1129_v55 = vld [vmem:[#allocation8 + $0x168] sm:$0xff] }
  0xa4   : > { %781 = vmatmul.f32.gmra.mxu2 %v522_v0  ;;  %v1126_v0 = vld [vmem:[#allocation8 + $0x150] sm:$0xff] }
  0xa5   : > { %692 = vmatmul.f32.vlgmr.msrb.gmra.mxu1 %v457_v45  ;;  %v1095_v45 = vld [vmem:[#allocation8 + $0x58] sm:$0xff] }
  0xa6   : > { %648 = vmatmul.f32.gmra.mxu0 %v418_v61  ;;  %1140 = vmatpush.msrb.mxu2 %v1095_v45  ;;  %v1089_v61 = vld [vmem:[#allocation8 + $0x28] sm:$0xff] }
  0xa7   : > { %1594 = vmatpush.msra.mxu3 %v1095_v45 }
  0xa8   : > { %1141 = vmatpush.msrb.mxu2 %v1094_v47 }
  0xa9   : > { %1595 = vmatpush.msra.mxu3 %v1094_v47 }
  0xaa   : > { %1142 = vmatpush.msrb.mxu2 %v1093_v49 }
  0xab   : > { %1596 = vmatpush.msra.mxu3 %v1093_v49 }
  0xac   : > { %784 = vmatmul.f32.gmra.mxu2 %v524_v4  ;;  %v1086_v4 = vld [vmem:[#allocation8 + $0x10] sm:$0xff] }
  0xad   : > { %695 = vmatmul.f32.gmra.mxu1 %v459_v52  ;;  %v1130_v52 = vld [vmem:[#allocation8 + $0x170] sm:$0xff]  ;;  %1143 = vmatpush.msrb.mxu2 %v1092_v29 }
  0xae   : > { %1267 = vmatpush.msrb.mxu0 %v1130_v52  ;;  %1597 = vmatpush.msra.mxu3 %v1092_v29 }
  0xaf   : > { %1144 = vmatpush.msrb.mxu2 %v1091_v54 }
  0xb0   : > { %1268 = vmatpush.msrb.mxu0 %v1129_v55  ;;  %1598 = vmatpush.msra.mxu3 %v1091_v54 }
  0xb1   : > { %1145 = vmatpush.msrb.mxu2 %v1090_v57 }
  0xb2   : > { %1269 = vmatpush.msrb.mxu0 %v1128_v59  ;;  %1599 = vmatpush.msra.mxu3 %v1090_v57 }
  0xb3   : > { %1146 = vmatpush.msrb.mxu2 %v1089_v61 }
  0xb4   : > { %787 = vmatmul.f32.gmra.mxu2 %v526_v17  ;;  %1270 = vmatpush.msrb.mxu0 %v1127_v62  ;;  %v1085_v17 = vld [vmem:[#allocation8 + $0x8] sm:$0xff] }
  0xb5   : > { %698 = vmatmul.f32.gmra.mxu1 %v461_v60  ;;  %v2317_v60 = vsel %vm454_vm2, %v484_v20, %v486_v53  ;;  %1600 = vmatpush.msra.mxu3 %v1089_v61 }
  0xb6   : > { %1147 = vmatpush.msrb.mxu2 %v1088_v63  ;;  %1271 = vmatpush.msrb.mxu0 %v1126_v0 }
  0xb7   : > { %1601 = vmatpush.msra.mxu3 %v1088_v63 }
  0xb8   : > { %1148 = vmatpush.msrb.mxu2 %v1087_v1 }
  0xb9   : > { %1602 = vmatpush.msra.mxu3 %v1087_v1 }
  0xba   : > { %1149 = vmatpush.msrb.mxu2 %v1086_v4 }
  0xbb   : > { %1603 = vmatpush.msra.mxu3 %v1086_v4 }
  0xbc   : > { %790 = vmatmul.f32.gmra.mxu2 %v528_v14  ;;  %v1120_v14 = vld [vmem:[#allocation8 + $0x120] sm:$0xff] }
  0xbd   : > { %701 = vmatmul.f32.gmra.mxu1 %v463_v2  ;;  %v1125_v2 = vld [vmem:[#allocation8 + $0x148] sm:$0xff]  ;;  %1150 = vmatpush.msrb.mxu2 %v1085_v17 }
  0xbe   : > { %1272 = vmatpush.msrb.mxu0 %v1125_v2  ;;  %1604 = vmatpush.msra.mxu3 %v1085_v17 }
  0xbf   : > { %1151 = vmatpush.msrb.mxu2 %v1084_v7 }
  0xc0   : > { %1273 = vmatpush.msrb.mxu0 %v1124_v5  ;;  %1605 = vmatpush.msra.mxu3 %v1084_v7 }
  0xc2   : > { %1274 = vmatpush.msrb.mxu0 %v1123_v6 }
  0xc4   : > { %793 = vmatmul.f32.gmra.mxu2 %v530_v19  ;;  %1275 = vmatpush.msrb.mxu0 %v1122_v8  ;;  %v1116_v19 = vld [vmem:[#allocation8 + $0x100] sm:$0xff] }
  0xc5   : > { %704 = vmatmul.f32.gmra.mxu1 %v465_v13 }
  0xc6   : > { %1276 = vmatpush.msrb.mxu0 %v1121_v9 }
  0xc8   : > { %1277 = vmatpush.msrb.mxu0 %v1120_v14 }
  0xca   : > { %1278 = vmatpush.msrb.mxu0 %v1119_v16 }
  0xcc   : > { %796 = vmatmul.f32.gmra.mxu2 %v532_v26  ;;  %1279 = vmatpush.msrb.mxu0 %v1118_v18  ;;  %v2334_v26 = vstv %s1551_s7  ;;  %s1868_s7 = scalar_lea.hbm %s1867_s29, 128 }
  0xcd   : > { %707 = vmatmul.f32.gmra.mxu1 %v467_v11  ;;  %p1869_p1 = scmp.ne.s32.totalorder %s1867_s29, %s1868_s7  ;;  %p1874_p11 = scmp.lt.s32.totalorder %s1872_s19, %s1868_s7 }
  0xcf   : > { %p1870_p4 = pnand %p1869_p1, %p2102_p5  ;;  %p1875_p12 = por %p1874_p11, %p1873_p10 }
  0xd1   : > { %p1871_p8 = pneg %p1870_p4 }
  0xd3   : > { %p1876_p13 = pnand %p1875_p12, %p1871_p8 }
  0xd4   : > { %799 = vmatmul.f32.gmra.mxu2 %v534_v32 }
  0xd5   : > { %710 = vmatmul.f32.gmra.mxu1 %v469_v33  ;;  %v1117_v33 = vld [vmem:[#allocation8 + $0x108] sm:$0xff] }
  0xd6   : > { %1280 = vmatpush.msrb.mxu0 %v1117_v33 }
  0xd8   : > { %1281 = vmatpush.msrb.mxu0 %v1116_v19 }
  0xdc   : > { %802 = vmatmul.f32.gmra.mxu2 %v536_v42 }
  0xdd   : > { %713 = vmatmul.f32.gmra.mxu1 %v471_v25 }
  0xe2   : > { %v2288_v30 = vpop.f32.mrf.mxu1 }
  0xe4   : > { %805 = vmatmul.f32.gmra.mxu2 %v538_v51 }
  0xe5   : > { %716 = vmatmul.f32.gmra.mxu1 %v473_v58 }
  0xea   : > { %v2297_v10 = vpop.f32.mrf.mxu1 }
  0xec   : > { %808 = vmatmul.f32.gmra.mxu2 %v537_v43 }
  0xed   : > { %719 = vmatmul.f32.gmra.mxu1 %v475_v12  ;;  %v625_v12 = vpop.f32.mrf.mxu0 }
  0xee   : > { %v626_v28 = vadd.f32 %v2339_v27, %v625_v12 }
  0xef   : > { %v761_v13 = vpop.f32.mrf.mxu2 }
  0xf2   : > { %v2305_v46 = vpop.f32.mrf.mxu1 }
  0xf5   : > { %722 = vmatmul.f32.gmra.mxu1 %v477_v22  ;;  %v628_v21 = vpop.f32.mrf.mxu0 }
  0xf6   : > { %v629_v40 = vadd.f32 %v2339_v27, %v628_v21 }
  0xf7   : > { %v764_v15 = vpop.f32.mrf.mxu2 }
  0xfa   : > { %v2312_v56 = vpop.f32.mrf.mxu1 }
  0xfd   : > { %725 = vmatmul.f32.gmra.mxu1 %v2283_v44  ;;  %v2332_v44 = vshrl.u32 %v829_v24, 7 }
  0xff   : > { %v767_v23 = vpop.f32.mrf.mxu2  ;;  %v850_v58 = vadd.s32 %v2334_v26, %v2332_v44  ;;  %v831_v37 = vadd.s32 8, %v2332_v44  ;;  %v832_v47 = vadd.s32 16, %v2332_v44  ;;  %v833_v61 = vadd.s32 24, %v2332_v44 }
 0x100   : > { %v834_v9 = vadd.s32 32, %v2332_v44 }
 0x101   : > { %vm867_vm3 = vcmp.ge.s32.totalorder %v850_v58, 0  ;;  %vm884_vm4 = vcmp.lt.s32.totalorder %v850_v58, 256  ;;  %v851_v41 = vadd.s32 %v2334_v26, %v831_v37  ;;  %v852_v29 = vadd.s32 %v2334_v26, %v832_v47 }
 0x102   : > { %v2320_v3 = vpop.f32.mrf.mxu1  ;;  %vm901_vm5 = vmand %vm867_vm3, %vm884_vm4  ;;  %v853_v5 = vadd.s32 %v2334_v26, %v833_v61  ;;  %v854_v21 = vadd.s32 %v2334_v26, %v834_v9 }
 0x103   : > { %vm868_vm6 = vcmp.ge.s32.totalorder %v851_v41, 0  ;;  %vm885_vm7 = vcmp.lt.s32.totalorder %v851_v41, 256  ;;  %vm869_vm9 = vcmp.ge.s32.totalorder %v852_v29, 0  ;;  %vm886_vm10 = vcmp.lt.s32.totalorder %v852_v29, 256  ;;  %v1113_v29 = vld [vmem:[#allocation8 + $0xe8] sm:$0xff] }
 0x104   : > { %vm902_vm8 = vmand %vm868_vm6, %vm885_vm7  ;;  %vm870_vm12 = vcmp.ge.s32.totalorder %v853_v5, 0  ;;  %vm887_vm13 = vcmp.lt.s32.totalorder %v853_v5, 256  ;;  %vm871_vm15 = vcmp.ge.s32.totalorder %v854_v21, 0  ;;  %vm888_vm0 = vcmp.lt.s32.totalorder %v854_v21, 256 }
 0x105   : > { %728 = vmatmul.f32.gmra.mxu1 %v2292_v31  ;;  %v631_v31 = vpop.f32.mrf.mxu0  ;;  %vm903_vm11 = vmand %vm869_vm9, %vm886_vm10 }
 0x106   : > { %v632_v50 = vadd.f32 %v2339_v27, %v631_v31  ;;  %vm904_vm14 = vmand %vm870_vm12, %vm887_vm13  ;;  %v1115_v31 = vld [vmem:[#allocation8 + $0xf8] sm:$0xff] }
 0x107   : > { %v770_v32 = vpop.f32.mrf.mxu2  ;;  %1201 = vmatpush.msrb.mxu3 %v1115_v31  ;;  %vm905_vm3 = vmand %vm871_vm15, %vm888_vm0 }
 0x10a   : > { %v2323_v11 = vpop.f32.mrf.mxu1 }
 0x10d   : > { %731 = vmatmul.f32.gmra.mxu1 %v2300_v39  ;;  %v634_v42 = vpop.f32.mrf.mxu0 }
 0x10e   : > { %v635_v4 = vadd.f32 %v2339_v27, %v634_v42 }
 0x10f   : > { %v2350_v43 = vpop.f32.mrf.mxu2 }
 0x112   : > { %v2326_v22 = vpop.f32.mrf.mxu1 }
 0x115   : > { %734 = vmatmul.f32.gmra.mxu1 %v2308_v48 }
 0x117   : > { %v2357_v63 = vpop.f32.mrf.mxu2 }
 0x11a   : > { %v2330_v25 = vpop.f32.mrf.mxu1 }
 0x11d   : > { %737 = vmatmul.f32.gmra.mxu1 %v2317_v60  ;;  %v637_v60 = vpop.f32.mrf.mxu0 }
 0x11e   : > { %v638_v19 = vadd.f32 %v2339_v27, %v637_v60 }
 0x11f   : > { %v2369_v18 = vpop.f32.mrf.mxu2 }
 0x122   : > { %v693_v34 = vpop.f32.mrf.mxu1 }
 0x123   : > { %v694_v35 = vadd.f32 %v693_v34, %v626_v28 }
 0x125   : > { %v762_v38 = vadd.f32 %v761_v13, %v694_v35  ;;  %740 = vmatmul.f32.gmra.mxu1 %v486_v53  ;;  %v640_v16 = vpop.f32.mrf.mxu0 }
 0x127   : > { %v812_v39 = vmax.f32 %v762_v38, 0.0 }
 0x129   : > { %1552 = vmatmul.msk.f32.vlgmr.msrb.gmra.mxu2 %vm901_vm5, %v812_v39  ;;  %v952_v36 = vsel %vm901_vm5, %v812_v39, 0.0 }
 0x12a   : > { %v696_v20 = vpop.f32.mrf.mxu1  ;;  %v986_v52 = vrot.slane %v952_v36, 1  ;;  %v1035_v53 = vrot.slane %v952_v36, 2 }
 0x12b   : > { %v697_v45 = vadd.f32 %v696_v20, %v629_v40  ;;  %v641_v40 = vadd.f32 %v2339_v27, %v640_v16  ;;  %v1114_v20 = vld [vmem:[#allocation8 + $0xf0] sm:$0xff] }
 0x12c   : > { %1202 = vmatpush.msrb.mxu3 %v1114_v20 }
 0x12d   : > { %v765_v48 = vadd.f32 %v764_v15, %v697_v45  ;;  %v643_v41 = vpop.f32.mrf.mxu0  ;;  %v782_v45 = vpop.f32.mrf.mxu2 }
 0x12e   : > { %1203 = vmatpush.msrb.mxu3 %v1113_v29 }
 0x12f   : > { %v813_v49 = vmax.f32 %v765_v48, 0.0 }
 0x131   : > { %v953_v51 = vsel %vm902_vm8, %v813_v49, 0.0  ;;  %1553 = vmatmul.msk.f32.gmra.mxu2 %vm902_vm8, %v813_v49 }
 0x132   : > { %v987_v54 = vrot.slane %v953_v51, 1  ;;  %v1036_v55 = vrot.slane %v953_v51, 2  ;;  %v699_v57 = vpop.f32.mrf.mxu1 }
 0x133   : > { %v700_v59 = vadd.f32 %v699_v57, %v632_v50 }
 0x134   : > { %v1037_v62 = vsel %vm505_vm1, %v1035_v53, %v1036_v55  ;;  %v2360_v0 = vsel %vm454_vm2, %v986_v52, %v987_v54 }
 0x135   : > { %v768_v1 = vadd.f32 %v767_v23, %v700_v59  ;;  %1282 = vmatmul.f32.vlgmr.msrb.gmra.mxu0 %v1037_v62  ;;  %v1112_v59 = vld [vmem:[#allocation8 + $0xe0] sm:$0xff]  ;;  %v646_v61 = vpop.f32.mrf.mxu0 }
 0x136   : > { %1204 = vmatpush.msrb.mxu3 %v1112_v59  ;;  %v647_v9 = vadd.f32 %v2339_v27, %v646_v61 }
 0x137   : > { %v814_v2 = vmax.f32 %v768_v1, 0.0 }
 0x139   : > { %v954_v13 = vsel %vm903_vm11, %v814_v2, 0.0  ;;  %1554 = vmatmul.msk.f32.gmra.mxu2 %vm903_vm11, %v814_v2 }
 0x13a   : > { %v989_v17 = vrot.slane %v954_v13, 1  ;;  %v1038_v6 = vrot.slane %v954_v13, 2  ;;  %v702_v7 = vpop.f32.mrf.mxu1  ;;  %v1111_v13 = vld [vmem:[#allocation8 + $0xd8] sm:$0xff] }
 0x13b   : > { %v703_v8 = vadd.f32 %v702_v7, %v635_v4  ;;  %v785_v4 = vpop.f32.mrf.mxu2  ;;  %1205 = vmatpush.msrb.mxu3 %v1111_v13  ;;  %v1105_v13 = vld [vmem:[#allocation8 + $0xa8] sm:$0xff] }
 0x13c   : > { %v1039_v12 = vsel %vm505_vm1, %v1036_v55, %v1038_v6  ;;  %v2367_v14 = vsel %vm454_vm2, %v987_v54, %v989_v17  ;;  %v644_v55 = vadd.f32 %v2339_v27, %v643_v41 }
 0x13d   : > { %v771_v15 = vadd.f32 %v770_v32, %v703_v8  ;;  %1285 = vmatmul.f32.gmra.mxu0 %v1039_v12  ;;  %v835_v32 = vadd.s32 40, %v2332_v44 }
 0x13f   : > { %v815_v33 = vmax.f32 %v771_v15, 0.0  ;;  %v855_v42 = vadd.s32 %v2334_v26, %v835_v32  ;;  %v1110_v15 = vld [vmem:[#allocation8 + $0xd0] sm:$0xff] }
 0x140   : > { %1206 = vmatpush.msrb.mxu3 %v1110_v15 }
 0x141   : > { %v955_v23 = vsel %vm904_vm14, %v815_v33, 0.0  ;;  %1555 = vmatmul.msk.f32.gmra.mxu2 %vm904_vm14, %v815_v33  ;;  %vm872_vm4 = vcmp.ge.s32.totalorder %v855_v42, 0  ;;  %vm889_vm5 = vcmp.lt.s32.totalorder %v855_v42, 256 }
 0x142   : > { %v991_v24 = vrot.slane %v955_v23, 1  ;;  %v1040_v28 = vrot.slane %v955_v23, 2  ;;  %v705_v58 = vpop.f32.mrf.mxu1  ;;  %vm906_vm6 = vmand %vm872_vm4, %vm889_vm5 }
 0x143   : > { %v706_v34 = vadd.f32 %v705_v58, %v638_v19  ;;  %v788_v58 = vpop.f32.mrf.mxu2 }
 0x144   : > { %v1041_v35 = vsel %vm505_vm1, %v1038_v6, %v1040_v28  ;;  %v2376_v37 = vsel %vm454_vm2, %v989_v17, %v991_v24 }
 0x145   : > { %v774_v38 = vadd.f32 %v2350_v43, %v706_v34  ;;  %1288 = vmatmul.f32.gmra.mxu0 %v1041_v35  ;;  %v836_v43 = vadd.s32 48, %v2332_v44 }
 0x147   : > { %v816_v39 = vmax.f32 %v774_v38, 0.0  ;;  %v856_v57 = vadd.s32 %v2334_v26, %v836_v43 }
 0x149   : > { %v956_v47 = vsel %vm905_vm3, %v816_v39, 0.0  ;;  %1556 = vmatmul.msk.f32.gmra.mxu2 %vm905_vm3, %v816_v39  ;;  %vm873_vm7 = vcmp.ge.s32.totalorder %v856_v57, 0  ;;  %vm890_vm8 = vcmp.lt.s32.totalorder %v856_v57, 256  ;;  %v1109_v39 = vld [vmem:[#allocation8 + $0xc8] sm:$0xff] }
 0x14a   : > { %v993_v48 = vrot.slane %v956_v47, 1  ;;  %v1042_v36 = vrot.slane %v956_v47, 2  ;;  %v708_v49 = vpop.f32.mrf.mxu1  ;;  %vm907_vm9 = vmand %vm873_vm7, %vm890_vm8  ;;  %1207 = vmatpush.msrb.mxu3 %v1109_v39  ;;  %v1108_v47 = vld [vmem:[#allocation8 + $0xc0] sm:$0xff] }
 0x14b   : > { %v709_v50 = vadd.f32 %v708_v49, %v641_v40  ;;  %v791_v43 = vpop.f32.mrf.mxu2 }
 0x14c   : > { %v1043_v51 = vsel %vm505_vm1, %v1040_v28, %v1042_v36  ;;  %v2384_v52 = vsel %vm454_vm2, %v991_v24, %v993_v48  ;;  %v838_v24 = vadd.s32 64, %v2332_v44  ;;  %v649_v28 = vpop.f32.mrf.mxu0  ;;  %1208 = vmatpush.msrb.mxu3 %v1108_v47 }
 0x14d   : > { %v777_v53 = vadd.f32 %v2357_v63, %v709_v50  ;;  %1291 = vmatmul.f32.gmra.mxu0 %v1043_v51  ;;  %v837_v63 = vadd.s32 56, %v2332_v44  ;;  %v650_v35 = vadd.f32 %v2339_v27, %v649_v28  ;;  %v1103_v28 = vld [vmem:[#allocation8 + $0x98] sm:$0xff] }
 0x14e   : > { %v858_v38 = vadd.s32 %v2334_v26, %v838_v24 }
 0x14f   : > { %v817_v54 = vmax.f32 %v777_v53, 0.0  ;;  %v857_v12 = vadd.s32 %v2334_v26, %v837_v63  ;;  %v1107_v53 = vld [vmem:[#allocation8 + $0xb8] sm:$0xff] }
 0x150   : > { %vm875_vm13 = vcmp.ge.s32.totalorder %v858_v38, 0  ;;  %vm892_vm14 = vcmp.lt.s32.totalorder %v858_v38, 256  ;;  %1209 = vmatpush.msrb.mxu3 %v1107_v53 }
 0x151   : > { %v957_v60 = vsel %vm906_vm6, %v817_v54, 0.0  ;;  %1557 = vmatmul.msk.f32.gmra.mxu2 %vm906_vm6, %v817_v54  ;;  %vm874_vm10 = vcmp.ge.s32.totalorder %v857_v12, 0  ;;  %vm891_vm11 = vcmp.lt.s32.totalorder %v857_v12, 256  ;;  %vm909_vm15 = vmand %vm875_vm13, %vm892_vm14  ;;  %v653_v54 = vadd.f32 %v2339_v27, %v2288_v30 }
 0x152   : > { %v995_v62 = vrot.slane %v957_v60, 1  ;;  %v1044_v1 = vrot.slane %v957_v60, 2  ;;  %v711_v2 = vpop.f32.mrf.mxu1  ;;  %vm908_vm12 = vmand %vm874_vm10, %vm891_vm11 }
 0x153   : > { %v712_v5 = vadd.f32 %v711_v2, %v644_v55 }
 0x154   : > { %v1045_v17 = vsel %vm505_vm1, %v1042_v36, %v1044_v1  ;;  %v2392_v6 = vsel %vm454_vm2, %v993_v48, %v995_v62 }
 0x155   : > { %v780_v7 = vadd.f32 %v2369_v18, %v712_v5  ;;  %1294 = vmatmul.f32.gmra.mxu0 %v1045_v17  ;;  %v794_v17 = vpop.f32.mrf.mxu2 }
 0x157   : > { %v818_v8 = vmax.f32 %v780_v7, 0.0  ;;  %v656_v7 = vadd.f32 %v2339_v27, %v2297_v10 }
 0x159   : > { %v958_v16 = vsel %vm907_vm9, %v818_v8, 0.0  ;;  %1558 = vmatmul.msk.f32.gmra.mxu2 %vm907_vm9, %v818_v8 }
 0x15a   : > { %v997_v33 = vrot.slane %v958_v16, 1  ;;  %v1046_v19 = vrot.slane %v958_v16, 2  ;;  %v714_v21 = vpop.f32.mrf.mxu1 }
 0x15b   : > { %v715_v23 = vadd.f32 %v714_v21, %v647_v9 }
 0x15c   : > { %v1047_v18 = vsel %vm505_vm1, %v1044_v1, %v1046_v19  ;;  %v2400_v31 = vsel %vm454_vm2, %v995_v62, %v997_v33  ;;  %v840_v62 = vadd.s32 80, %v2332_v44  ;;  %v1106_v1 = vld [vmem:[#allocation8 + $0xb0] sm:$0xff] }
 0x15d   : > { %v783_v34 = vadd.f32 %v782_v45, %v715_v23  ;;  %1297 = vmatmul.f32.gmra.mxu0 %v1047_v18  ;;  %v839_v45 = vadd.s32 72, %v2332_v44  ;;  %1210 = vmatpush.msrb.mxu3 %v1106_v1  ;;  %v797_v39 = vpop.f32.mrf.mxu2  ;;  %v1100_v1 = vld [vmem:[#allocation8 + $0x80] sm:$0xff] }
 0x15e   : > { %v860_v63 = vadd.s32 %v2334_v26, %v840_v62 }
 0x15f   : > { %v819_v32 = vmax.f32 %v783_v34, 0.0  ;;  %v859_v51 = vadd.s32 %v2334_v26, %v839_v45  ;;  %1211 = vmatpush.msrb.mxu3 %v1105_v13  ;;  %v1102_v45 = vld [vmem:[#allocation8 + $0x90] sm:$0xff] }
 0x160   : > { %vm877_vm5 = vcmp.ge.s32.totalorder %v860_v63, 0  ;;  %vm894_vm6 = vcmp.lt.s32.totalorder %v860_v63, 256 }
 0x161   : > { %v959_v40 = vsel %vm908_vm12, %v819_v32, 0.0  ;;  %1559 = vmatmul.msk.f32.vlgmr.msra.gmra.mxu3 %vm908_vm12, %v819_v32  ;;  %vm876_vm0 = vcmp.ge.s32.totalorder %v859_v51, 0  ;;  %vm893_vm3 = vcmp.lt.s32.totalorder %v859_v51, 256  ;;  %vm911_vm7 = vmand %vm877_vm5, %vm894_vm6 }
 0x162   : > { %v999_v41 = vrot.slane %v959_v40, 1  ;;  %v1048_v42 = vrot.slane %v959_v40, 2  ;;  %v717_v20 = vpop.f32.mrf.mxu1  ;;  %vm910_vm4 = vmand %vm876_vm0, %vm893_vm3 }
 0x163   : > { %v718_v48 = vadd.f32 %v717_v20, %v650_v35 }
 0x164   : > { %v1049_v36 = vsel %vm505_vm1, %v1046_v19, %v1048_v42  ;;  %v2407_v49 = vsel %vm454_vm2, %v997_v33, %v999_v41  ;;  %v841_v33 = vadd.s32 88, %v2332_v44  ;;  %v1104_v19 = vld [vmem:[#allocation8 + $0xa0] sm:$0xff] }
 0x165   : > { %v786_v50 = vadd.f32 %v785_v4, %v718_v48  ;;  %1300 = vmatmul.f32.gmra.mxu0 %v1049_v36  ;;  %1212 = vmatpush.msrb.mxu3 %v1104_v19  ;;  %v1101_v36 = vld [vmem:[#allocation8 + $0x88] sm:$0xff] }
 0x166   : > { %v861_v18 = vadd.s32 %v2334_v26, %v841_v33  ;;  %v668_v33 = vadd.f32 %v2339_v27, %v2323_v11 }
 0x167   : > { %v820_v29 = vmax.f32 %v786_v50, 0.0  ;;  %1213 = vmatpush.msrb.mxu3 %v1103_v28  ;;  %v662_v50 = vadd.f32 %v2339_v27, %v2312_v56  ;;  %v845_v28 = vadd.s32 120, %v2332_v44 }
 0x168   : > { %vm878_vm8 = vcmp.ge.s32.totalorder %v861_v18, 0  ;;  %vm895_vm9 = vcmp.lt.s32.totalorder %v861_v18, 256 }
 0x169   : > { %v960_v55 = vsel %vm909_vm15, %v820_v29, 0.0  ;;  %1560 = vmatmul.msk.f32.gmra.mxu3 %vm909_vm15, %v820_v29  ;;  %vm912_vm10 = vmand %vm878_vm8, %vm895_vm9  ;;  %v865_v11 = vadd.s32 %v2334_v26, %v845_v28  ;;  %v1717_v28 = vld [vmem:[%s2150_s0 + $0x8] sm:$0xff] }
 0x16a   : > { %v1001_v57 = vrot.slane %v960_v55, 1  ;;  %v1050_v59 = vrot.slane %v960_v55, 2  ;;  %v720_v60 = vpop.f32.mrf.mxu1  ;;  %1214 = vmatpush.msrb.mxu3 %v1102_v45  ;;  %v843_v55 = vadd.s32 104, %v2332_v44 }
 0x16b   : > { %v721_v61 = vadd.f32 %v720_v60, %v653_v54  ;;  %vm882_vm6 = vcmp.ge.s32.totalorder %v865_v11, 0 }
 0x16c   : > { %v1051_v2 = vsel %vm505_vm1, %v1048_v42, %v1050_v59  ;;  %v2415_v4 = vsel %vm454_vm2, %v999_v41, %v1001_v57  ;;  %v842_v41 = vadd.s32 96, %v2332_v44  ;;  %1215 = vmatpush.msrb.mxu3 %v1101_v36  ;;  %v863_v62 = vadd.s32 %v2334_v26, %v843_v55 }
 0x16d   : > { %v789_v5 = vadd.f32 %v788_v58, %v721_v61  ;;  %1303 = vmatmul.f32.gmra.mxu0 %v1051_v2  ;;  %v659_v58 = vadd.f32 %v2339_v27, %v2305_v46  ;;  %v665_v2 = vadd.f32 %v2339_v27, %v2320_v3 }
 0x16e   : > { %v862_v48 = vadd.s32 %v2334_v26, %v842_v41  ;;  %1216 = vmatpush.msrb.mxu3 %v1100_v1  ;;  %vm880_vm14 = vcmp.ge.s32.totalorder %v863_v62, 0  ;;  %vm897_vm15 = vcmp.lt.s32.totalorder %v863_v62, 256 }
 0x16f   : > { %v821_v30 = vmax.f32 %v789_v5, 0.0  ;;  %vm914_vm0 = vmand %vm880_vm14, %vm897_vm15 }
 0x170   : > { %vm879_vm11 = vcmp.ge.s32.totalorder %v862_v48, 0  ;;  %vm896_vm12 = vcmp.lt.s32.totalorder %v862_v48, 256  ;;  %v846_v48 = vadd.s32 128, %v2332_v44 }
 0x171   : > { %v961_v8 = vsel %vm910_vm4, %v821_v30, 0.0  ;;  %1561 = vmatmul.msk.f32.gmra.mxu3 %vm910_vm4, %v821_v30  ;;  %vm913_vm13 = vmand %vm879_vm11, %vm896_vm12 }
 0x172   : > { %v1003_v9 = vrot.slane %v961_v8, 1  ;;  %v1052_v12 = vrot.slane %v961_v8, 2  ;;  %v723_v15 = vpop.f32.mrf.mxu1 }
 0x173   : > { %v724_v16 = vadd.f32 %v723_v15, %v656_v7  ;;  %v844_v7 = vadd.s32 112, %v2332_v44 }
 0x174   : > { %v1053_v21 = vsel %vm505_vm1, %v1050_v59, %v1052_v12  ;;  %v2423_v23 = vsel %vm454_vm2, %v1001_v57, %v1003_v9  ;;  %v800_v59 = vpop.f32.mrf.mxu2 }
 0x175   : > { %v792_v24 = vadd.f32 %v791_v43, %v724_v16  ;;  %1306 = vmatmul.f32.gmra.mxu0 %v1053_v21  ;;  %v864_v16 = vadd.s32 %v2334_v26, %v844_v7 }
 0x177   : > { %v822_v10 = vmax.f32 %v792_v24, 0.0  ;;  %vm881_vm3 = vcmp.ge.s32.totalorder %v864_v16, 0  ;;  %vm898_vm4 = vcmp.lt.s32.totalorder %v864_v16, 256 }
 0x178   : > { %vm915_vm5 = vmand %vm881_vm3, %vm898_vm4 }
 0x179   : > { %v962_v34 = vsel %vm911_vm7, %v822_v10, 0.0  ;;  %1562 = vmatmul.msk.f32.gmra.mxu3 %vm911_vm7, %v822_v10  ;;  %vm899_vm7 = vcmp.lt.s32.totalorder %v865_v11, 256 }
 0x17a   : > { %v1005_v32 = vrot.slane %v962_v34, 1  ;;  %v1054_v35 = vrot.slane %v962_v34, 2  ;;  %v726_v38 = vpop.f32.mrf.mxu1  ;;  %vm916_vm8 = vmand %vm882_vm6, %vm899_vm7 }
 0x17b   : > { %v727_v40 = vadd.f32 %v726_v38, %v659_v58 }
 0x17c   : > { %v1055_v42 = vsel %vm505_vm1, %v1052_v12, %v1054_v35  ;;  %v2431_v20 = vsel %vm454_vm2, %v1003_v9, %v1005_v32  ;;  %v803_v15 = vpop.f32.mrf.mxu2 }
 0x17d   : > { %v795_v47 = vadd.f32 %v794_v17, %v727_v40  ;;  %1309 = vmatmul.f32.gmra.mxu0 %v1055_v42 }
 0x17f   : > { %v823_v46 = vmax.f32 %v795_v47, 0.0 }
 0x181   : > { %v963_v43 = vsel %vm912_vm10, %v823_v46, 0.0  ;;  %1563 = vmatmul.msk.f32.gmra.mxu3 %vm912_vm10, %v823_v46 }
 0x182   : > { %v1007_v29 = vrot.slane %v963_v43, 1  ;;  %v1056_v51 = vrot.slane %v963_v43, 2  ;;  %v729_v53 = vpop.f32.mrf.mxu1 }
 0x183   : > { %v730_v54 = vadd.f32 %v729_v53, %v662_v50 }
 0x184   : > { %v1057_v57 = vsel %vm505_vm1, %v1054_v35, %v1056_v51  ;;  %v2439_v60 = vsel %vm454_vm2, %v1005_v32, %v1007_v29  ;;  %v806_v38 = vpop.f32.mrf.mxu2 }
 0x185   : > { %v798_v61 = vadd.f32 %v797_v39, %v730_v54  ;;  %1312 = vmatmul.f32.gmra.mxu0 %v1057_v57  ;;  %v671_v39 = vadd.f32 %v2339_v27, %v2326_v22  ;;  %v866_v22 = vadd.s32 %v2334_v26, %v846_v48 }
 0x187   : > { %v824_v56 = vmax.f32 %v798_v61, 0.0  ;;  %vm883_vm9 = vcmp.ge.s32.totalorder %v866_v22, 0  ;;  %vm900_vm10 = vcmp.lt.s32.totalorder %v866_v22, 256 }
 0x188   : > { %vm917_vm11 = vmand %vm883_vm9, %vm900_vm10 }
 0x189   : > { %v964_v5 = vsel %vm913_vm13, %v824_v56, 0.0  ;;  %1564 = vmatmul.msk.f32.gmra.mxu3 %vm913_vm13, %v824_v56 }
 0x18a   : > { %v1009_v30 = vrot.slane %v964_v5, 1  ;;  %v1058_v63 = vrot.slane %v964_v5, 2  ;;  %v732_v13 = vpop.f32.mrf.mxu1 }
 0x18b   : > { %v733_v17 = vadd.f32 %v732_v13, %v665_v2  ;;  %v2501_v13 = vld [vmem:[%s2614_s5] ss:$0 sm:$0xff] }
 0x18c   : > { %v1059_v8 = vsel %vm505_vm1, %v1056_v51, %v1058_v63  ;;  %v2447_v9 = vsel %vm454_vm2, %v1007_v29, %v1009_v30  ;;  %v674_v29 = vadd.f32 %v2339_v27, %v2330_v25  ;;  %v809_v57 = vpop.f32.mrf.mxu2 }
 0x18d   : > { %v801_v12 = vadd.f32 %v800_v59, %v733_v17  ;;  %1315 = vmatmul.f32.gmra.mxu0 %v1059_v8 }
 0x18f   : > { %v825_v3 = vmax.f32 %v801_v12, 0.0 }
 0x191   : > { %v965_v19 = vsel %vm914_vm0, %v825_v3, 0.0  ;;  %1565 = vmatmul.msk.f32.gmra.mxu3 %vm914_vm0, %v825_v3  ;;  %v1716_v3 = vld [vmem:[%s2150_s0] sm:$0xff] }
 0x192   : > { %v1011_v21 = vrot.slane %v965_v19, 1  ;;  %v1060_v24 = vrot.slane %v965_v19, 2  ;;  %v735_v10 = vpop.f32.mrf.mxu1 }
 0x193   : > { %v736_v18 = vadd.f32 %v735_v10, %v668_v33 }
 0x194   : > { %v1061_v58 = vsel %vm505_vm1, %v1058_v63, %v1060_v24  ;;  %v1012_v34 = vsel %vm454_vm2, %v1009_v30, %v1011_v21 }
 0x195   : > { %v804_v32 = vadd.f32 %v803_v15, %v736_v18  ;;  %1318 = vmatmul.f32.gmra.mxu0 %v1061_v58 }
 0x197   : > { %v826_v35 = vmax.f32 %v804_v32, 0.0 }
 0x199   : > { %v966_v40 = vsel %vm915_vm5, %v826_v35, 0.0  ;;  %1566 = vmatmul.msk.f32.gmra.mxu3 %vm915_vm5, %v826_v35 }
 0x19a   : > { %v1013_v41 = vrot.slane %v966_v40, 1  ;;  %v1062_v42 = vrot.slane %v966_v40, 2  ;;  %v738_v47 = vpop.f32.mrf.mxu1  ;;  %v1718_v40 = vld [vmem:[%s2150_s0 + $0x10] sm:$0xff] }
 0x19b   : > { %v739_v46 = vadd.f32 %v738_v47, %v671_v39 }
 0x19c   : > { %v1063_v45 = vsel %vm505_vm1, %v1060_v24, %v1062_v42  ;;  %v1014_v36 = vsel %vm454_vm2, %v1011_v21, %v1013_v41 }
 0x19d   : > { %v807_v50 = vadd.f32 %v806_v38, %v739_v46  ;;  %1321 = vmatmul.f32.gmra.mxu0 %v1063_v45 }
 0x19f   : > { %v827_v43 = vmax.f32 %v807_v50, 0.0 }
 0x1a1   : > { %v967_v51 = vsel %vm916_vm8, %v827_v43, 0.0  ;;  %1567 = vmatmul.msk.f32.gmra.mxu3 %vm916_vm8, %v827_v43  ;;  %v1719_v43 = vld [vmem:[%s2150_s0 + $0x18] sm:$0xff] }
 0x1a2   : > { %v1015_v53 = vrot.slane %v967_v51, 1  ;;  %v1064_v54 = vrot.slane %v967_v51, 2  ;;  %v741_v55 = vpop.f32.mrf.mxu1 }
 0x1a3   : > { %v742_v44 = vadd.f32 %v741_v55, %v674_v29 }
 0x1a4   : > { %v1065_v59 = vsel %vm505_vm1, %v1062_v42, %v1064_v54  ;;  %v1016_v61 = vsel %vm454_vm2, %v1013_v41, %v1015_v53 }
 0x1a5   : > { %v810_v56 = vadd.f32 %v809_v57, %v742_v44  ;;  %1324 = vmatmul.f32.gmra.mxu0 %v1065_v59  ;;  %v1720_v59 = vld [vmem:[%s2150_s0 + $0x20] sm:$0xff] }
 0x1a7   : > { %v828_v26 = vmax.f32 %v810_v56, 0.0 }
 0x1a9   : > { %v968_v62 = vsel %vm917_vm11, %v828_v26, 0.0  ;;  %1217 = vmatmul.f32.vlgmr.msrb.gmra.mxu3 %v2360_v0 }
 0x1aa   : > { %v1017_v25 = vrot.slane %v968_v62, 1  ;;  %v1066_v27 = vrot.slane %v968_v62, 2 }
 0x1ac   : > { %v1067_v1 = vsel %vm505_vm1, %v1064_v54, %v1066_v27  ;;  %v1018_v2 = vsel %vm454_vm2, %v1015_v53, %v1017_v25 }
 0x1ad   : > { %1327 = vmatmul.f32.gmra.mxu0 %v1067_v1 }
 0x1b1   : > { %1220 = vmatmul.f32.gmra.mxu3 %v2367_v14 }
 0x1b9   : > { %1223 = vmatmul.f32.gmra.mxu3 %v2376_v37 }
 0x1c1   : > { %1226 = vmatmul.f32.gmra.mxu3 %v2384_v52 }
 0x1c9   : > { %1229 = vmatmul.f32.gmra.mxu3 %v2392_v6 }
 0x1d1   : > { %1232 = vmatmul.f32.gmra.mxu3 %v2400_v31  ;;  %v1283_v31 = vpop.f32.mrf.mxu0 }
 0x1d9   : > { %1235 = vmatmul.f32.gmra.mxu3 %v2407_v49 }
 0x1e1   : > { %1238 = vmatmul.f32.gmra.mxu3 %v2415_v4  ;;  %v1286_v4 = vpop.f32.mrf.mxu0 }
 0x1e4   : > { %v2476_v0 = vpop.f32.mrf.mxu3 }
 0x1e9   : > { %1241 = vmatmul.f32.gmra.mxu3 %v2423_v23  ;;  %v1153_v23 = vpop.f32.mrf.mxu2 }
 0x1ea   : > { %v1154_v17 = vadd.f32 %v2501_v13, %v1153_v23 }
 0x1ec   : > { %v2479_v5 = vpop.f32.mrf.mxu3 }
 0x1f1   : > { %1244 = vmatmul.f32.gmra.mxu3 %v2431_v20  ;;  %v1156_v63 = vpop.f32.mrf.mxu2 }
 0x1f2   : > { %v1157_v33 = vadd.f32 %v2501_v13, %v1156_v63 }
 0x1f4   : > { %v2482_v14 = vpop.f32.mrf.mxu3 }
 0x1f9   : > { %1247 = vmatmul.f32.gmra.mxu3 %v2439_v60  ;;  %v1289_v60 = vpop.f32.mrf.mxu0  ;;  %v1159_v15 = vpop.f32.mrf.mxu2 }
 0x1fa   : > { %v1160_v32 = vadd.f32 %v2501_v13, %v1159_v15  ;;  %v1175_v15 = vadd.f32 %v2501_v13, %v2476_v0  ;;  %v1724_v0 = vld [vmem:[%s2150_s0 + $0x40] sm:$0xff] }
 0x1fc   : > { %v2485_v37 = vpop.f32.mrf.mxu3 }
 0x201   : > { %1250 = vmatmul.f32.gmra.mxu3 %v2447_v9  ;;  %v1292_v9 = vpop.f32.mrf.mxu0 }
 0x204   : > { %v2488_v52 = vpop.f32.mrf.mxu3 }
 0x209   : > { %1253 = vmatmul.f32.gmra.mxu3 %v1012_v34  ;;  %v1295_v18 = vpop.f32.mrf.mxu0  ;;  %v1162_v34 = vpop.f32.mrf.mxu2 }
 0x20a   : > { %v1163_v47 = vadd.f32 %v2501_v13, %v1162_v34 }
 0x20c   : > { %v2490_v6 = vpop.f32.mrf.mxu3 }
 0x211   : > { %1256 = vmatmul.f32.gmra.mxu3 %v1014_v36  ;;  %v1298_v42 = vpop.f32.mrf.mxu0  ;;  %v1165_v48 = vpop.f32.mrf.mxu2 }
 0x212   : > { %v1166_v29 = vadd.f32 %v2501_v13, %v1165_v48 }
 0x214   : > { %v2492_v49 = vpop.f32.mrf.mxu3 }
 0x219   : > { %1259 = vmatmul.f32.gmra.mxu3 %v1016_v61  ;;  %v1301_v53 = vpop.f32.mrf.mxu0  ;;  %v1168_v57 = vpop.f32.mrf.mxu2 }
 0x21a   : > { %v1169_v56 = vadd.f32 %v2501_v13, %v1168_v57  ;;  %v1727_v57 = vld [vmem:[%s2150_s0 + $0x58] sm:$0xff] }
 0x21c   : > { %v2494_v20 = vpop.f32.mrf.mxu3 }
 0x221   : > { %1262 = vmatmul.f32.gmra.mxu3 %v1018_v2  ;;  %v1304_v27 = vpop.f32.mrf.mxu0  ;;  %v1171_v2 = vpop.f32.mrf.mxu2 }
 0x222   : > { %v1172_v23 = vadd.f32 %v2501_v13, %v1171_v2 }
 0x224   : > { %v2496_v30 = vpop.f32.mrf.mxu3 }
 0x22c   : > { %v1218_v7 = vpop.f32.mrf.mxu3 }
 0x22d   : > { %v1219_v8 = vadd.f32 %v1218_v7, %v1154_v17 }
 0x22f   : > { %v1284_v12 = vadd.f32 %v1283_v31, %v1219_v8  ;;  %v1721_v31 = vld [vmem:[%s2150_s0 + $0x28] sm:$0xff]  ;;  %v1307_v8 = vpop.f32.mrf.mxu0 }
 0x231   : > { %v1331_v16 = vadd.f32 %v1716_v3, %v1284_v12 }
 0x233   : > { %v1347_v19 = vmax.f32 %v1331_v16, 0.0 }
 0x234   : > { %v1221_v21 = vpop.f32.mrf.mxu3 }
 0x235   : > { %1363 = vst [vmem:[%s2508_s13] sm:$0xff] %v1347_v19  ;;  %v1222_v24 = vadd.f32 %v1221_v21, %v1157_v33  ;;  %v1723_v21 = vld [vmem:[%s2150_s0 + $0x38] sm:$0xff] }
 0x237   : > { %v1287_v10 = vadd.f32 %v1286_v4, %v1222_v24 }
 0x239   : > { %v1332_v58 = vadd.f32 %v1717_v28, %v1287_v10  ;;  %v1310_v10 = vpop.f32.mrf.mxu0 }
 0x23b   : > { %v1348_v35 = vmax.f32 %v1332_v58, 0.0 }
 0x23c   : > { %v1224_v11 = vpop.f32.mrf.mxu3 }
 0x23d   : > { %1364 = vst [vmem:[%s2508_s13 + $0x8] sm:$0xff] %v1348_v35  ;;  %v1225_v38 = vadd.f32 %v1224_v11, %v1160_v32  ;;  %v1181_v11 = vadd.f32 %v2501_v13, %v2482_v14 }
 0x23f   : > { %v1290_v39 = vadd.f32 %v1289_v60, %v1225_v38 }
 0x241   : > { %v1333_v41 = vadd.f32 %v1718_v40, %v1290_v39  ;;  %v1313_v39 = vpop.f32.mrf.mxu0 }
 0x243   : > { %v1349_v46 = vmax.f32 %v1333_v41, 0.0 }
 0x244   : > { %v1227_v45 = vpop.f32.mrf.mxu3 }
 0x245   : > { %1365 = vst [vmem:[%s2508_s13 + $0x10] sm:$0xff] %v1349_v46  ;;  %v1228_v36 = vadd.f32 %v1227_v45, %v1163_v47  ;;  %v1184_v46 = vadd.f32 %v2501_v13, %v2485_v37 }
 0x247   : > { %v1293_v50 = vadd.f32 %v1292_v9, %v1228_v36  ;;  %v1722_v9 = vld [vmem:[%s2150_s0 + $0x30] sm:$0xff] }
 0x249   : > { %v1334_v22 = vadd.f32 %v1719_v43, %v1293_v50  ;;  %v1316_v50 = vpop.f32.mrf.mxu0  ;;  %v1726_v43 = vld [vmem:[%s2150_s0 + $0x50] sm:$0xff] }
 0x24b   : > { %v1350_v51 = vmax.f32 %v1334_v22, 0.0 }
 0x24c   : > { %v1230_v54 = vpop.f32.mrf.mxu3 }
 0x24d   : > { %1366 = vst [vmem:[%s2508_s13 + $0x18] sm:$0xff] %v1350_v51  ;;  %v1231_v55 = vadd.f32 %v1230_v54, %v1166_v29  ;;  %v1187_v29 = vadd.f32 %v2501_v13, %v2488_v52 }
 0x24f   : > { %v1296_v44 = vadd.f32 %v1295_v18, %v1231_v55  ;;  %v1178_v18 = vadd.f32 %v2501_v13, %v2479_v5  ;;  %v1725_v5 = vld [vmem:[%s2150_s0 + $0x48] sm:$0xff] }
 0x251   : > { %v1335_v61 = vadd.f32 %v1720_v59, %v1296_v44  ;;  %v1319_v37 = vpop.f32.mrf.mxu0  ;;  %v1190_v59 = vadd.f32 %v2501_v13, %v2490_v6 }
 0x253   : > { %v1351_v26 = vmax.f32 %v1335_v61, 0.0 }
 0x254   : > { %v1233_v62 = vpop.f32.mrf.mxu3 }
 0x255   : > { %1367 = vst [vmem:[%s2508_s13 + $0x20] sm:$0xff] %v1351_v26  ;;  %v1234_v25 = vadd.f32 %v1233_v62, %v1169_v56  ;;  %v1728_v62 = vld [vmem:[%s2150_s0 + $0x60] sm:$0xff] }
 0x257   : > { %v1299_v1 = vadd.f32 %v1298_v42, %v1234_v25 }
 0x259   : > { %v1336_v4 = vadd.f32 %v1721_v31, %v1299_v1  ;;  %v1193_v1 = vadd.f32 %v2501_v13, %v2492_v49 }
 0x25b   : > { %v1352_v60 = vmax.f32 %v1336_v4, 0.0 }
 0x25c   : > { %v1236_v63 = vpop.f32.mrf.mxu3 }
 0x25d   : > { %1368 = vst [vmem:[%s2508_s13 + $0x28] sm:$0xff] %v1352_v60  ;;  %v1237_v17 = vadd.f32 %v1236_v63, %v1172_v23  ;;  %v1729_v23 = vld [vmem:[%s2150_s0 + $0x68] sm:$0xff]  ;;  %v1196_v63 = vadd.f32 %v2501_v13, %v2494_v20 }
 0x25f   : > { %v1302_v7 = vadd.f32 %v1301_v53, %v1237_v17 }
 0x261   : > { %v1337_v12 = vadd.f32 %v1722_v9, %v1302_v7 }
 0x263   : > { %v1353_v3 = vmax.f32 %v1337_v12, 0.0  ;;  %v1730_v12 = vld [vmem:[%s2150_s0 + $0x70] sm:$0xff] }
 0x264   : > { %v1239_v16 = vpop.f32.mrf.mxu3 }
 0x265   : > { %1369 = vst [vmem:[%s2508_s13 + $0x30] sm:$0xff] %v1353_v3  ;;  %v1240_v33 = vadd.f32 %v1239_v16, %v1175_v15  ;;  %v1199_v3 = vadd.f32 %v2501_v13, %v2496_v30 }
 0x267   : > { %v1305_v19 = vadd.f32 %v1304_v27, %v1240_v33  ;;  %v1322_v27 = vpop.f32.mrf.mxu0 }
 0x269   : > { %v1338_v24 = vadd.f32 %v1723_v21, %v1305_v19 }
 0x26b   : > { %v1354_v28 = vmax.f32 %v1338_v24, 0.0  ;;  %v1731_v24 = vld [vmem:[%s2150_s0 + $0x78] sm:$0xff] }
 0x26c   : > { %v1242_v58 = vpop.f32.mrf.mxu3 }
 0x26d   : > { %1370 = vst [vmem:[%s2508_s13 + $0x38] sm:$0xff] %v1354_v28  ;;  %v1243_v34 = vadd.f32 %v1242_v58, %v1178_v18 }
 0x26f   : > { %v1308_v32 = vadd.f32 %v1307_v8, %v1243_v34  ;;  %v1325_v7 = vpop.f32.mrf.mxu0 }
 0x271   : > { %v1339_v35 = vadd.f32 %v1724_v0, %v1308_v32 }
 0x273   : > { %v1355_v38 = vmax.f32 %v1339_v35, 0.0 }
 0x274   : > { %v1245_v40 = vpop.f32.mrf.mxu3 }
 0x275   : > { %1371 = vst [vmem:[%s2508_s13 + $0x40] sm:$0xff] %v1355_v38  ;;  %v1246_v41 = vadd.f32 %v1245_v40, %v1181_v11 }
 0x277   : > { %v1311_v42 = vadd.f32 %v1310_v10, %v1246_v41  ;;  %v1328_v19 = vpop.f32.mrf.mxu0 }
 0x279   : > { %v1340_v47 = vadd.f32 %v1725_v5, %v1311_v42 }
 0x27b   : > { %v1356_v48 = vmax.f32 %v1340_v47, 0.0 }
 0x27c   : > { %v1248_v45 = vpop.f32.mrf.mxu3 }
 0x27d   : > { %1372 = vst [vmem:[%s2508_s13 + $0x48] sm:$0xff] %v1356_v48  ;;  %v1249_v36 = vadd.f32 %v1248_v45, %v1184_v46 }
 0x27f   : > { %v1314_v14 = vadd.f32 %v1313_v39, %v1249_v36 }
 0x281   : > { %v1341_v22 = vadd.f32 %v1726_v43, %v1314_v14 }
 0x283   : > { %v1357_v51 = vmax.f32 %v1341_v22, 0.0 }
 0x284   : > { %v1251_v53 = vpop.f32.mrf.mxu3 }
 0x285   : > { %1373 = vst [vmem:[%s2508_s13 + $0x50] sm:$0xff] %v1357_v51  ;;  %v1252_v54 = vadd.f32 %v1251_v53, %v1187_v29 }
 0x287   : > { %v1317_v55 = vadd.f32 %v1316_v50, %v1252_v54 }
 0x289   : > { %v1342_v44 = vadd.f32 %v1727_v57, %v1317_v55 }
 0x28b   : > { %v1358_v61 = vmax.f32 %v1342_v44, 0.0 }
 0x28c   : > { %v1254_v56 = vpop.f32.mrf.mxu3 }
 0x28d   : > { %1374 = vst [vmem:[%s2508_s13 + $0x58] sm:$0xff] %v1358_v61  ;;  %v1255_v26 = vadd.f32 %v1254_v56, %v1190_v59 }
 0x28f   : > { %v1320_v52 = vadd.f32 %v1319_v37, %v1255_v26 }
 0x291   : > { %v1343_v25 = vadd.f32 %v1728_v62, %v1320_v52 }
 0x293   : > { %v1359_v2 = vmax.f32 %v1343_v25, 0.0 }
 0x294   : > { %v1257_v31 = vpop.f32.mrf.mxu3 }
 0x295   : > { %1375 = vst [vmem:[%s2508_s13 + $0x60] sm:$0xff] %v1359_v2  ;;  %v1258_v4 = vadd.f32 %v1257_v31, %v1193_v1 }
 0x297   : > { %v1323_v6 = vadd.f32 %v1322_v27, %v1258_v4 }
 0x299   : > { %v1344_v60 = vadd.f32 %v1729_v23, %v1323_v6 }
 0x29b   : > { %v1360_v17 = vmax.f32 %v1344_v60, 0.0 }
 0x29c   : > { %v1260_v8 = vpop.f32.mrf.mxu3 }
 0x29d   : > { %1376 = vst [vmem:[%s2508_s13 + $0x68] sm:$0xff] %v1360_v17  ;;  %v1261_v49 = vadd.f32 %v1260_v8, %v1196_v63 }
 0x29f   : > { %v1326_v9 = vadd.f32 %v1325_v7, %v1261_v49 }
 0x2a1   : > { %v1345_v15 = vadd.f32 %v1730_v12, %v1326_v9 }
 0x2a3   : > { %v1361_v20 = vmax.f32 %v1345_v15, 0.0 }
 0x2a4   : > { %v1263_v16 = vpop.f32.mrf.mxu3 }
 0x2a5   : > { %1377 = vst [vmem:[%s2508_s13 + $0x70] sm:$0xff] %v1361_v20  ;;  %v1264_v33 = vadd.f32 %v1263_v16, %v1199_v3 }
 0x2a7   : > { %v1329_v21 = vadd.f32 %v1328_v19, %v1264_v33 }
 0x2a9   : > { %v1346_v10 = vadd.f32 %v1731_v24, %v1329_v21 }
 0x2ab   : > { %v1362_v18 = vmax.f32 %v1346_v10, 0.0 }
 0x2ad   : > { %1378 = vst [vmem:[%s2508_s13 + $0x78] sm:$0xff] %v1362_v18 }
 0x2ae   : > { %1879 = shalt.err (!%p1876_p13)
}
 0x2af   : > { %s1968_s9 = smov 128   ;;  %s1969_s0 = smov 8  }
 0x2b0   : > { %1618 = dma.vmem_to_hbm [thread:$0]  (%p2102_p5), %s1395_s12, 2048, %s1397_s10, %s1380_s11, %s1968_s9, %s1968_s9, %s1969_s0  }
 0x2b1 PF: > { %s2651_s13 = sld [smem:[#allocation16_spill]]  ;;  %p1643_p0 = scmp.ge.s32.totalorder %s1962_s28, 2 }
 0x2b3   : > { %p1635_p3 = pnand %p1643_p0, %p2060_p6 }
 0x2b5   : > { %p1636_p7 = pneg %p1635_p3 }
 0x2b7   : > { %s1411_s14 = sand.u32 1, %s2651_s13  }
 0x2b8   : > { %s1412_s15 = scalar_lea.sflag [#allocation4], %s1411_s14 }
 0x2b9   : > { %1929 = dma.done.wait (%p1636_p7), %s1412_s15, 2048  }
 0x2ba   : > { %1931 = vsyncadd (%p1636_p7), %s1412_s15, 4294965248  ;;  %s26_s28 = sadd.s32 1, %s1962_s28   ;;  %s2653_s17 = sld [smem:[#allocation22_spill]] }
 0x2bb   : > { %p23_p9 = scmp.ge.s32.totalorder %s26_s28, 6   ;;  %s2654_s30 = sld [smem:[#allocation19_spill]] }
 0x2bc   : > { %s2655_s20 = sld [smem:[#allocation21_spill]]  ;;  %s2656_s21 = smov %s1938_s22 }
 0x2bd   : > { %s2657_s22 = smov %s1942_s23  ;;  %s2659_s24 = smov %s1954_s26 }
 0x2be   : > { %s2660_s25 = smov %s1958_s27  ;;  %25 = sbr.rel (!%p23_p9) target bundleno = 15 (0xf), region = 110 }
 0x2c0   : > { %s2658_s23 = smov %s2653_s17 }
 0x2c1   : > { %s2661_s26 = smov %s2654_s30 }
 0x2c2   : > { %s2662_s27 = smov %s2655_s20 }
 0x2c3   :  { %1418 = vsyncpa [#allocation3], 1 }
 0x2c4   :  { %1420 = vsyncpa [#allocation3 + $0x1], 1 }
 0x2c5   :  { %1421 = vsyncpa [#allocation6], 1 }
 0x2c6   :  { %1423 = vsyncpa [#allocation6 + $0x1], 1 }
 0x2c7   :  { %1424 = vsyncpa [#allocation9], 1 }
 0x2c8   :  { %1425 = vsyncpa [#allocation4], 1 }
 0x2c9   :  { %1427 = vsyncpa [#allocation4 + $0x1], 1 }

</bundles_post_ra>
